<compile_context>
chip_gen: v7x
topology: tpu7x:2x2x1
jax: 0.10.0
libtpu: 0.0.40
codegen_flags: <defaults>
</compile_context>

<pallas_src>
import math

import jax
import jax.numpy as jnp
from jax.experimental import pallas as pl
from jax.experimental.pallas import tpu as pltpu


def _round_up(n, m):
    return ((n + m - 1) // m) * m


# ----------------------------- kernels --------------------------------------


def _mlp2_kernel(x_ref, w1_ref, b1_ref, w2_ref, b2_ref, o_ref):
    """y = (x @ W1 + b1) @ W2 + b2.  Operands are pre-padded lane-dense."""
    x = x_ref[...]
    h = jnp.dot(x, w1_ref[...], preferred_element_type=jnp.float32) + b1_ref[...]
    y = jnp.dot(h, w2_ref[...], preferred_element_type=jnp.float32) + b2_ref[...]
    o_ref[...] = y.astype(o_ref.dtype)


def _affine_kernel(x_ref, w_ref, b_ref, o_ref):
    """y = x @ W + b  with W = W1@W2, b = b1@W2 + b2 (precomposed on host)."""
    o_ref[...] = (
        jnp.dot(x_ref[...], w_ref[...], preferred_element_type=jnp.float32)
        + b_ref[...]
    ).astype(o_ref.dtype)


# ------------------------- pallas_call plumbing ------------------------------


def _row_tiled_call(kernel, x2d, weights, out_cols, *, tm):
    """Run `kernel` over (tm, D) row tiles of x2d; weights stay whole/resident."""
    M, D = x2d.shape
    M_pad = _round_up(M, tm)
    if M_pad != M:
        x2d = jnp.zeros((M_pad, D), x2d.dtype).at[:M].set(x2d)

    grid = (M_pad // tm,)

    def full(a):
        # Whole (small) weight/bias resident every grid step; the constant
        # index_map means it is DMA'd into VMEM once and reused.
        # TODO(synk): single-buffer these (pipeline_mode=pl.Buffered(1)) before
        # scaling D/H so double-buffered weight copies don't dominate VMEM
        # (matters most on v7x's 64 MiB VMEM).
        return pl.BlockSpec(a.shape, lambda i: (0,) * a.ndim)

    out = pl.pallas_call(
        kernel,
        out_shape=jax.ShapeDtypeStruct((M_pad, out_cols), jnp.float32),
        grid_spec=pltpu.PrefetchScalarGridSpec(
            num_scalar_prefetch=0,
            grid=grid,
            in_specs=[pl.BlockSpec((tm, D), lambda i: (i, 0))]
            + [full(w) for w in weights],
            out_specs=pl.BlockSpec((tm, out_cols), lambda i: (i, 0)),
        ),
        compiler_params=pltpu.CompilerParams(
            dimension_semantics=("parallel",)
        ),
    )(x2d, *weights)
    return out[:M]


# ------------------------------ forward --------------------------------------


def mlp_forward(x, params, *, fuse_linear_layers=False, tm=None):
    """Forward of the torch MLP module.

    x: (..., D) float32.  params use the torch Linear layout:
      w1: (H, D), b1: (H,), w2: (OUT, H), b2: (OUT,)
    Returns (..., OUT) float32.
    """
    w1, b1, w2, b2 = params["w1"], params["b1"], params["w2"], params["b2"]
    *lead, D = x.shape
    H = w1.shape[0]
    OUT = w2.shape[0]
    M = math.prod(lead) if lead else 1
    x2d = x.reshape(M, D).astype(jnp.float32)

    # Big MXU-friendly row tile; pad the row count up to a multiple of it.
    if tm is None:
        tm = 256 if M >= 256 else _round_up(max(M, 8), 8)

    # Lane-dense zero padding: H -> multiple of 128, OUT -> multiple of 128.
    # Zero columns/rows contribute nothing, so this is numerically exact.
    Hp = _round_up(H, 128)
    OUTp = _round_up(OUT, 128)

    w1t = jnp.zeros((D, Hp), jnp.float32).at[:, :H].set(w1.T)
    b1p = jnp.zeros((1, Hp), jnp.float32).at[:, :H].set(b1)
    w2t = jnp.zeros((Hp, OUTp), jnp.float32).at[:H, :OUT].set(w2.T)
    b2p = jnp.zeros((1, OUTp), jnp.float32).at[:, :OUT].set(b2)

    if fuse_linear_layers:
        # No activation between the Linears => single affine map.
        wc = jnp.dot(w1t, w2t, preferred_element_type=jnp.float32)  # (D, OUTp)
        bc = jnp.dot(b1p, w2t, preferred_element_type=jnp.float32) + b2p
        out = _row_tiled_call(_affine_kernel, x2d, (wc, bc), OUTp, tm=tm)
    else:
        out = _row_tiled_call(
            _mlp2_kernel, x2d, (w1t, b1p, w2t, b2p), OUTp, tm=tm
        )

    return out[:, :OUT].reshape(*lead, OUT)


def reference_forward(x, params):
    """Pure-JAX reference mirroring the torch module exactly."""
    h = (
        jnp.dot(x, params["w1"].T, precision=jax.lax.Precision.HIGHEST)
        + params["b1"]
    )
    return (
        jnp.dot(h, params["w2"].T, precision=jax.lax.Precision.HIGHEST)
        + params["b2"]
    )


if __name__ == "__main__":
    # Module defaults: inputs=768, H=200, out=11.  Token batch (B, S, D) so the
    # flattened row count M = B*S = 512 gives tm=256 and a 2-step parallel grid.
    B, S, D, H, OUT = 4, 128, 768, 200, 11

    key = jax.random.PRNGKey(0)
    kx, k1, k2, k3, k4 = jax.random.split(key, 5)
    x = jax.random.normal(kx, (B, S, D), jnp.float32)
    params = {
        "w1": jax.random.normal(k1, (H, D), jnp.float32) * 0.02,
        "b1": jax.random.normal(k2, (H,), jnp.float32) * 0.02,
        "w2": jax.random.normal(k3, (OUT, H), jnp.float32) * 0.02,
        "b2": jax.random.normal(k4, (OUT,), jnp.float32) * 0.02,
    }

    ref = reference_forward(x, params)

    # Faithful two-matmul kernel.
    out = jax.block_until_ready(mlp_forward(x, params))
    assert out.shape == (B, S, OUT), out.shape
    err = float(jnp.max(jnp.abs(out - ref)))
    assert jnp.allclose(out, ref, atol=5e-3, rtol=5e-3), err

    # Precomposed single-matmul kernel (valid because the MLP has no activation).
    out_fused = jax.block_until_ready(
        mlp_forward(x, params, fuse_linear_layers=True)
    )
    assert out_fused.shape == (B, S, OUT), out_fused.shape
    err_fused = float(jnp.max(jnp.abs(out_fused - ref)))
    assert jnp.allclose(out_fused, ref, atol=5e-3, rtol=5e-3), err_fused

    print("KERNEL_OK")
</pallas_src>

<mosaic_0001>
module attributes {stable_mosaic.version = 11 : i64} {
  func.func @_mlp2_kernel(%arg0: i32, %arg1: memref<256x768xf32, #tpu.memory_space<vmem>>, %arg2: memref<768x256xf32, #tpu.memory_space<vmem>>, %arg3: memref<1x256xf32, #tpu.memory_space<vmem>>, %arg4: memref<256x128xf32, #tpu.memory_space<vmem>>, %arg5: memref<1x128xf32, #tpu.memory_space<vmem>>, %arg6: memref<256x128xf32, #tpu.memory_space<vmem>>) attributes {dimension_semantics = [#tpu.dimension_semantics<parallel>], iteration_bounds = array<i64: 2>, scalar_prefetch = 0 : i64, scratch_operands = 0 : i64, tpu.core_type = #tpu.core_type<tc>, window_params = [{transform_indices = @transform_0, window_bounds = array<i64: 256, 768>}, {pipeline_mode = #tpu.pipeline_mode<synchronous>, transform_indices = @transform_1, window_bounds = array<i64: 768, 256>}, {pipeline_mode = #tpu.pipeline_mode<synchronous>, transform_indices = @transform_2, window_bounds = array<i64: 1, 256>}, {pipeline_mode = #tpu.pipeline_mode<synchronous>, transform_indices = @transform_3, window_bounds = array<i64: 256, 128>}, {pipeline_mode = #tpu.pipeline_mode<synchronous>, transform_indices = @transform_4, window_bounds = array<i64: 1, 128>}, {transform_indices = @transform_5, window_bounds = array<i64: 256, 128>}]} {
    %c0 = arith.constant 0 : index
    %c0_0 = arith.constant 0 : index
    %0 = vector.load %arg1[%c0, %c0_0] : memref<256x768xf32, #tpu.memory_space<vmem>>, vector<256x768xf32>
    %c0_1 = arith.constant 0 : index
    %c0_2 = arith.constant 0 : index
    %1 = vector.load %arg2[%c0_1, %c0_2] : memref<768x256xf32, #tpu.memory_space<vmem>>, vector<768x256xf32>
    %cst = arith.constant dense<0.000000e+00> : vector<256x256xf32>
    %2 = tpu.matmul %0, %1, %cst {dimension_numbers = #tpu.dot_dimension_numbers<[1], [0], [0], [1], [0, 0, 1, 1], [], []>} : vector<256x768xf32>, vector<768x256xf32>, vector<256x256xf32> -> vector<256x256xf32>
    %c0_3 = arith.constant 0 : index
    %c0_4 = arith.constant 0 : index
    %3 = vector.load %arg3[%c0_3, %c0_4] : memref<1x256xf32, #tpu.memory_space<vmem>>, vector<1x256xf32>
    %4 = vector.broadcast %3 : vector<1x256xf32> to vector<256x256xf32>
    %5 = arith.addf %2, %4 : vector<256x256xf32>
    %c0_5 = arith.constant 0 : index
    %c0_6 = arith.constant 0 : index
    %6 = vector.load %arg4[%c0_5, %c0_6] : memref<256x128xf32, #tpu.memory_space<vmem>>, vector<256x128xf32>
    %cst_7 = arith.constant dense<0.000000e+00> : vector<256x128xf32>
    %7 = tpu.matmul %5, %6, %cst_7 {dimension_numbers = #tpu.dot_dimension_numbers<[1], [0], [0], [1], [0, 0, 1, 1], [], []>} : vector<256x256xf32>, vector<256x128xf32>, vector<256x128xf32> -> vector<256x128xf32>
    %c0_8 = arith.constant 0 : index
    %c0_9 = arith.constant 0 : index
    %8 = vector.load %arg5[%c0_8, %c0_9] : memref<1x128xf32, #tpu.memory_space<vmem>>, vector<1x128xf32>
    %9 = vector.broadcast %8 : vector<1x128xf32> to vector<256x128xf32>
    %10 = arith.addf %7, %9 : vector<256x128xf32>
    %c0_10 = arith.constant 0 : index
    %c0_11 = arith.constant 0 : index
    %11 = vector.load %arg6[%c0_10, %c0_11] : memref<256x128xf32, #tpu.memory_space<vmem>>, vector<256x128xf32>
    tpu.vector_store %arg6[%c0_10, %c0_11], %10 {strides = array<i32>} : memref<256x128xf32, #tpu.memory_space<vmem>>, vector<256x128xf32>,
    return
  }
  func.func @transform_0(%arg0: i32) -> (i32, i32) {
    %c0_i32 = arith.constant 0 : i32
    %c0_i32_0 = arith.constant 0 : i32
    return %arg0, %c0_i32 : i32, i32
  }
  func.func @transform_1(%arg0: i32) -> (i32, i32) {
    %c0_i32 = arith.constant 0 : i32
    %c0_i32_0 = arith.constant 0 : i32
    %c0_i32_1 = arith.constant 0 : i32
    return %c0_i32, %c0_i32_0 : i32, i32
  }
  func.func @transform_2(%arg0: i32) -> (i32, i32) {
    %c0_i32 = arith.constant 0 : i32
    %c0_i32_0 = arith.constant 0 : i32
    %c0_i32_1 = arith.constant 0 : i32
    return %c0_i32, %c0_i32_0 : i32, i32
  }
  func.func @transform_3(%arg0: i32) -> (i32, i32) {
    %c0_i32 = arith.constant 0 : i32
    %c0_i32_0 = arith.constant 0 : i32
    %c0_i32_1 = arith.constant 0 : i32
    return %c0_i32, %c0_i32_0 : i32, i32
  }
  func.func @transform_4(%arg0: i32) -> (i32, i32) {
    %c0_i32 = arith.constant 0 : i32
    %c0_i32_0 = arith.constant 0 : i32
    %c0_i32_1 = arith.constant 0 : i32
    return %c0_i32, %c0_i32_0 : i32, i32
  }
  func.func @transform_5(%arg0: i32) -> (i32, i32) {
    %c0_i32 = arith.constant 0 : i32
    %c0_i32_0 = arith.constant 0 : i32
    return %arg0, %c0_i32 : i32, i32
  }
}

</mosaic_0001>

<bundles_post_ra>
// kernel: tpu_custom_call.1
= control target key start
LH: loop header
LB: loop body
LE: loop exit
PB: predicated region body
PF: predicated region fallthrough
CT: control target
= control target key end

     0   :  { %10 = vsyncpa [#allocation3], 0  ;;  %s3512_s0 = inlined_call_operand.hbm [shape: f32[512,768], index: 0, kind: input, shape index: {}]   ;;  %s3513_s1 = inlined_call_operand.hbm [shape: f32[768,256], index: 1, kind: input, shape index: {}]   ;;  %s3514_s2 = inlined_call_operand.hbm [shape: f32[1,256], index: 2, kind: input, shape index: {}]   ;;  %s3515_s3 = inlined_call_operand.hbm [shape: f32[256,128], index: 3, kind: input, shape index: {}]   ;;  %s3516_s4 = inlined_call_operand.hbm [shape: f32[1,128], index: 4, kind: input, shape index: {}]   ;;  %s3517_s5 = inlined_call_operand.hbm [shape: f32[512,128], index: 5, kind: output, shape index: {}]  }
   0x1   :  { %12 = vsyncpa [#allocation3 + $0x1], 0 }
   0x2   :  { %13 = vsyncpa [#allocation6], 0 }
   0x3   :  { %14 = vsyncpa [#allocation9], 0 }
   0x4   :  { %15 = vsyncpa [#allocation4], 0 }
   0x5   :  { %17 = vsyncpa [#allocation4 + $0x1], 0  ;;  %s2705_s18 = smov 0   ;;  %s2707_s19 = smov 0  }
   0x6   :  { %s2709_s20 = smov 0   ;;  %s2711_s21 = smov 0  }
   0x7 LB: > { %s2726_s22 = sadd.s32 4294967295, %s2658_s21   ;;  %s1888_s23 = sadd.s32 4294967294, %s2658_s21   ;;  %s2658_s21 = sphi %s2711_s21, %s3540_s21   ;;  %s2654_s20 = sphi %s2709_s20, %s3539_s20   ;;  %s2650_s19 = sphi %s2707_s19, %s3538_s19   ;;  %s2646_s18 = sphi %s2705_s18, %s3537_s18  }
   0x8   : > { %p43_p0 = scmp.ne.s32.totalorder %s2650_s19, %s2646_s18  ;;  %p3518_p1 = scmp.eq.s32.totalorder %s2726_s22, 0 }
   0x9   : > { %p157_p3 = scmp.eq.s32.totalorder %s1888_s23, 1  ;;  %p1889_p5 = scmp.ge.s32.totalorder %s2658_s21, 1 }
   0xa   : > { %p2735_p4 = por %p3518_p1, %p43_p0  ;;  %p164_p7 = scmp.lt.s32.totalorder %s2658_s21, 3 }
   0xb   : > { %p2740_p6 = por %p157_p3, %p43_p0  ;;  %s2660_s27 = smov [#allocation5]  }
   0xc   : > { %s3521_s24 = scalar_select %p2735_p4, 1, 0 }
   0xd   : > { %s3522_s25 = scalar_select %p2740_p6, 1, 0 }
   0xe   : > { %p2745_p8 = pnand %p1889_p5, %p164_p7  ;;  %s176_s28 = sshll.u32 %s2660_s27, 4  ;;  %s2749_s28 = int_to_ptr.vmem [resolvable:$true] %s176_s28 }
   0xf   : > { %s2661_s30 = smov [#allocation8]   ;;  %s2442_s9 = scalar_lea.hbm %s3513_s1, 24576 }
  0x10   : > { %s3523_s26 = scalar_select %p2745_p8, 1, 0 }
  0x11   : > { %p2366_p9 = pneg %p2745_p8  ;;  %s200_s6 = sshll.u32 %s2661_s30, 4  ;;  %s2760_s6 = int_to_ptr.vmem [resolvable:$true] %s200_s6 }
  0x12   : > { %p2443_p12 = scmp.ne.s32.totalorder %s3513_s1, %s2442_s9  ;;  %p2449_p5 = scmp.lt.u32.totalorder %s2442_s9, %s3513_s1 }
  0x13   : > { %p2756_p11 = pnand %p2366_p9, %p3518_p1 }
  0x15   : > { %p2770_p13 = pneg %p2756_p11 }
  0x17   : > { %p2445_p0 = pnand %p2770_p13, %p2443_p12 }
  0x19   : > { %p2446_p3 = pneg %p2445_p0 }
  0x1b   : > { %p2451_p7 = pnand %p2449_p5, %p2446_p3 }
  0x1d   : > { %2454 = shalt.err (!%p2451_p7)
}
  0x1e   : > { %s2455_s15 = scalar_lea.vmem %s2749_s28, 24576  ;;  %p2463_p2 = scmp.lt.s32.totalorder %s2749_s28, %s2749_s28 }
  0x1f   : > { %p2456_p9 = scmp.ne.s32.totalorder %s2749_s28, %s2455_s15  ;;  %p2464_p6 = scmp.lt.s32.totalorder %s2455_s15, %s2455_s15 }
  0x21   : > { %p2458_p10 = pnand %p2456_p9, %p2770_p13  ;;  %p2465_p12 = por %p2464_p6, %p2463_p2 }
  0x23   : > { %p2459_p1 = pneg %p2458_p10 }
  0x25   : > { %p2466_p0 = pnand %p2465_p12, %p2459_p1 }
  0x27   : > { %2469 = shalt.err (!%p2466_p0)
}
  0x28   : > { %s2662_s16 = smov 256   ;;  %s2663_s17 = smov 16  }
  0x29   : > { %2369 = dma.hbm_to_vmem [thread:$0]  (!%p2756_p11), %s3513_s1, 24576, %s2749_s28, [#allocation6], %s2662_s16, %s2662_s16, %s2663_s17  }
  0x2a   : > { %s2470_s8 = scalar_lea.hbm %s3515_s3, 4096 }
  0x2b   : > { %p2471_p2 = scmp.ne.s32.totalorder %s3515_s3, %s2470_s8  ;;  %p2477_p10 = scmp.lt.u32.totalorder %s2470_s8, %s3515_s3 }
  0x2d   : > { %p2473_p1 = pnand %p2471_p2, %p2770_p13 }
  0x2f   : > { %p2474_p6 = pneg %p2473_p1 }
  0x31   : > { %p2479_p3 = pnand %p2477_p10, %p2474_p6 }
  0x33   : > { %2482 = shalt.err (!%p2479_p3)
}
  0x34   : > { %s2483_s28 = scalar_lea.vmem %s2760_s6, 4096  ;;  %p2491_p12 = scmp.lt.s32.totalorder %s2760_s6, %s2760_s6 }
  0x35   : > { %p2484_p5 = scmp.ne.s32.totalorder %s2760_s6, %s2483_s28  ;;  %p2492_p0 = scmp.lt.s32.totalorder %s2483_s28, %s2483_s28 }
  0x37   : > { %p2486_p7 = pnand %p2484_p5, %p2770_p13  ;;  %p2493_p2 = por %p2492_p0, %p2491_p12 }
  0x39   : > { %p2487_p9 = pneg %p2486_p7 }
  0x3b   : > { %p2494_p1 = pnand %p2493_p2, %p2487_p9 }
  0x3d   : > { %2497 = shalt.err (!%p2494_p1)
}
  0x3e   : > { %s2664_s14 = smov 128   ;;  %s2665_s15 = smov 8  }
  0x3f   : > { %2375 = dma.hbm_to_vmem [thread:$0]  (!%p2756_p11), %s3515_s3, 4096, %s2760_s6, [#allocation9], %s2664_s14, %s2664_s14, %s2665_s15  }
  0x40   : > { %s2666_s23 = smov [#allocation7]   ;;  %s2667_s30 = smov [#allocation10]  }
  0x41   : > { %s190_s27 = sshll.u32 %s2666_s23, 4  ;;  %s214_s7 = sshll.u32 %s2667_s30, 4  ;;  %s191_s27 = int_to_ptr.vmem [resolvable:$true] %s190_s27  ;;  %s2814_s7 = int_to_ptr.vmem [resolvable:$true] %s214_s7 }
  0x42   : > { %s2498_s10 = scalar_lea.hbm %s3514_s2, 32 }
  0x43   : > { %p2499_p6 = scmp.ne.s32.totalorder %s3514_s2, %s2498_s10  ;;  %p2505_p5 = scmp.lt.u32.totalorder %s2498_s10, %s3514_s2 }
  0x45   : > { %p2501_p10 = pnand %p2499_p6, %p2770_p13 }
  0x47   : > { %p2502_p3 = pneg %p2501_p10 }
  0x49   : > { %p2507_p7 = pnand %p2505_p5, %p2502_p3 }
  0x4b   : > { %2510 = shalt.err (!%p2507_p7)
}
  0x4c   : > { %s2511_s14 = scalar_lea.vmem %s191_s27, 32  ;;  %p2519_p2 = scmp.lt.s32.totalorder %s191_s27, %s191_s27 }
  0x4d   : > { %p2512_p9 = scmp.ne.s32.totalorder %s191_s27, %s2511_s14  ;;  %p2520_p1 = scmp.lt.s32.totalorder %s2511_s14, %s2511_s14 }
  0x4f   : > { %p2514_p12 = pnand %p2512_p9, %p2770_p13  ;;  %p2521_p4 = por %p2520_p1, %p2519_p2 }
  0x51   : > { %p2515_p0 = pneg %p2514_p12 }
  0x53   : > { %p2522_p8 = pnand %p2521_p4, %p2515_p0 }
  0x55   : > { %2525 = shalt.err (!%p2522_p8)
}
  0x56   : > { %2372 = dma.hbm_to_vmem [thread:$0]  (!%p2756_p11), %s3514_s2, 32, %s191_s27, [#allocation6]  }
  0x57   : > { %s2526_s30 = scalar_lea.hbm %s3516_s4, 16 }
  0x58   : > { %p2527_p6 = scmp.ne.s32.totalorder %s3516_s4, %s2526_s30  ;;  %p2533_p4 = scmp.lt.u32.totalorder %s2526_s30, %s3516_s4 }
  0x5a   : > { %p2529_p10 = pnand %p2527_p6, %p2770_p13 }
  0x5c   : > { %p2530_p3 = pneg %p2529_p10 }
  0x5e   : > { %p2535_p8 = pnand %p2533_p4, %p2530_p3 }
  0x60   : > { %2538 = shalt.err (!%p2535_p8)
}
  0x61   : > { %s2539_s27 = scalar_lea.vmem %s2814_s7, 16  ;;  %s2546_s13 = scalar_lea.vmem %s2814_s7, 32 }
  0x62   : > { %p2540_p5 = scmp.ne.s32.totalorder %s2814_s7, %s2539_s27  ;;  %p2547_p12 = scmp.lt.s32.totalorder %s2814_s7, %s2814_s7 }
  0x63   : > { %p2548_p0 = scmp.lt.s32.totalorder %s2546_s13, %s2539_s27 }
  0x64   : > { %p2542_p7 = pnand %p2540_p5, %p2770_p13 }
  0x65   : > { %p2549_p2 = por %p2548_p0, %p2547_p12 }
  0x66   : > { %p2543_p9 = pneg %p2542_p7 }
  0x68   : > { %p2550_p1 = pnand %p2549_p2, %p2543_p9 }
  0x6a   : > { %2553 = shalt.err (!%p2550_p1)
}
  0x6b   : > { %2378 = dma.hbm_to_vmem [thread:$0]  (!%p2756_p11), %s3516_s4, 16, %s2814_s7, [#allocation9]  }
  0x6c   : > { %s2859_s12 = sadd.s32 1, %s2658_s21   ;;  %s30_s14 = sadd.s32 1, %s2654_s20 }
  0x6d   : > { %s27_s29 = ssub.s32 %s2658_s21, %s2859_s12  ;;  %p37_p6 = scmp.ne.s32.totalorder %s2654_s20, %s2650_s19 }
  0x6e   : > { %p28_p13 = scmp.eq.s32.totalorder %s27_s29, 0  ;;  %p38_p10 = scmp.eq.s32.totalorder %s2658_s21, 0 }
  0x6f   : > { %p3526_p4 = scmp.eq.s32.totalorder %s2726_s22, 1  ;;  %p2391_p5 = scmp.lt.s32.totalorder %s2658_s21, 2 }
  0x70   : > { %s2868_s15 = scalar_select %p28_p13, %s2654_s20, %s30_s14  }
  0x71   : > { %p39_p3 = por %p38_p10, %p37_p6  ;;  %p2872_p8 = por %p3526_p4, %p37_p6 }
  0x72   : > { %s225_s17 = sand.u32 1, %s2654_s20   ;;  %s2344_s7 = smul.u32 24576, %s2658_s21 }
  0x73   : > { %s2343_s23 = smul.u32 1536, %s225_s17  ;;  %p2879_p11 = pnand %p2391_p5, %p39_p3 }
  0x74   : > { %s2886_s10 = scalar_lea.hbm %s3512_s0, %s2344_s7  ;;  %s2890_s13 = scalar_lea.sflag [#allocation3], %s225_s17 }
  0x75   : > { %s229_s11 = scalar_lea.vmem [#allocation2], %s2343_s23  ;;  %s2554_s28 = scalar_lea.hbm %s2886_s10, 24576 }
  0x76   : > { %s237_s27 = sshll.u32 %s229_s11, 4  ;;  %p2555_p7 = scmp.ne.s32.totalorder %s2886_s10, %s2554_s28  ;;  %s2888_s27 = int_to_ptr.vmem [resolvable:$true] %s237_s27 }
  0x77   : > { %p2556_p9 = pneg %p2879_p11  ;;  %s2559_s14 = scalar_lea.hbm %s3512_s0, 49152 }
  0x78   : > { %p2560_p2 = scmp.lt.u32.totalorder %s2886_s10, %s3512_s0  ;;  %p2561_p1 = scmp.lt.u32.totalorder %s2559_s14, %s2554_s28 }
  0x79   : > { %p2557_p12 = pnand %p2556_p9, %p2555_p7  ;;  %p2563_p6 = scmp.lt.u32.totalorder %s2554_s28, %s2886_s10 }
  0x7a   : > { %p2562_p13 = por %p2561_p1, %p2560_p2 }
  0x7b   : > { %p2558_p0 = pneg %p2557_p12 }
  0x7c   : > { %p2564_p10 = por %p2563_p6, %p2562_p13 }
  0x7e   : > { %p2565_p3 = pnand %p2564_p10, %p2558_p0 }
  0x80   : > { %2568 = shalt.err (!%p2565_p3)
}
  0x81   : > { %s2569_s17 = scalar_lea.vmem %s2888_s27, 24576  ;;  %s2668_s23 = smov [#allocation2]  }
  0x82   : > { %p2570_p4 = scmp.ne.s32.totalorder %s2888_s27, %s2569_s17  ;;  %s2574_s9 = sshll.u32 %s2668_s23, 4  ;;  %s2575_s9 = int_to_ptr.vmem [resolvable:$false] %s2574_s9 }
  0x83   : > { %s2576_s11 = scalar_lea.vmem %s2575_s9, 49152  ;;  %p2577_p12 = scmp.lt.s32.totalorder %s2888_s27, %s2575_s9 }
  0x84   : > { %p2572_p5 = pnand %p2570_p4, %p2556_p9  ;;  %p2578_p2 = scmp.lt.s32.totalorder %s2576_s11, %s2569_s17 }
  0x86   : > { %p2573_p7 = pneg %p2572_p5  ;;  %p2579_p1 = por %p2578_p2, %p2577_p12 }
  0x88   : > { %p2580_p13 = pnand %p2579_p1, %p2573_p7 }
  0x8a   : > { %2583 = shalt.err (!%p2580_p13)
}
  0x8b   : > { %s2669_s28 = smov 768   ;;  %s2670_s6 = smov 48  }
  0x8c   : > { %2382 = dma.hbm_to_vmem [thread:$0]  (!%p2879_p11), %s2886_s10, 24576, %s2888_s27, %s2890_s13, %s2669_s28, %s2669_s28, %s2670_s6  }
  0x8d   : > { %p3529_p9 = scmp.ne.s32.totalorder %s3523_s26, 0 }
  0x8e   : > { %s2921_s29 = sand.u32 (!%p3529_p9), 1, %s2650_s19   ;;  %p3530_p0 = scmp.ne.s32.totalorder (!%p3529_p9), %s3521_s24, 0 }
  0x8f   : > { %249 = sbr.rel (%p3529_p9) target bundleno = 922 (0x39a), region = 40  ;;  %s252_s7 = scalar_lea.sflag (!%p3529_p9), [#allocation3], %s2921_s29 }
  0x90   : > { %s2345_s14 = smul.u32 (!%p3529_p9), 1536, %s2921_s29 }
  0x92   : > { %s2925_s8 = scalar_lea.vmem (!%p3529_p9), [#allocation2], %s2345_s14 }
  0x96   : > { %2629 = dma.done.wait (%p3530_p0), %s252_s7, 24576  }
  0x97   : > { %2631 = vsyncadd (%p3530_p0), %s252_s7, 4294942720  ;;  %p3531_p11 = scmp.eq.s32.totalorder %s2726_s22, 0 }
  0x99   : > { %2633 = dma.done.wait (%p3531_p11), [#allocation6], 24608   ;;  %p3532_p6 = pmov %p3531_p11 }
  0x9b   : > { %2635 = vsyncadd (%p3532_p6), [#allocation6], 4294942688  ;;  %p3533_p10 = pmov %p3532_p6 }
  0x9c   : > { %p3534_p3 = pmov %p3532_p6 }
  0x9d   : > { %2637 = dma.done.wait (%p3533_p10), [#allocation9], 4112  }
  0x9e   : > { %2639 = vsyncadd (%p3534_p3), [#allocation9], 4294963184  ;;  %v557_v0 = vld [vmem:[#allocation5 + $0x208] sm:$0xff]  ;;  %v559_v1 = vld [vmem:[#allocation5 + $0x218] sm:$0xff]  ;;  %s1903_s24 = sshll.u32 %s2921_s29, 8  ;;  %s1910_s30 = sshll.u32 %s2726_s22, 12 }
  0x9f   : > { %v556_v2 = vld [vmem:[#allocation5 + $0x200] sm:$0xff]  ;;  %v1975_v3 = vpack.c.bf16 %v559_v1, %v557_v0  ;;  %v558_v4 = vld [vmem:[#allocation5 + $0x210] sm:$0xff]  ;;  %v561_v5 = vld [vmem:[#allocation5 + $0x228] sm:$0xff]  ;;  %s3396_s26 = scalar_lea.vmem [#allocation11], %s1903_s24  ;;  %s3464_s17 = scalar_lea.hbm %s3517_s5, %s1910_s30 }
  0xa0   : > { %v563_v6 = vld [vmem:[#allocation5 + $0x238] sm:$0xff]  ;;  %v1977_v7 = vpack.c.bf16 %v558_v4, %v556_v2  ;;  %v560_v9 = vld [vmem:[#allocation5 + $0x220] sm:$0xff]  ;;  %v562_v10 = vld [vmem:[#allocation5 + $0x230] sm:$0xff]  ;;  %s1777_s10 = sshll.u32 %s3396_s26, 4  ;;  %s1764_s23 = scalar_lea.sflag [#allocation4], %s2921_s29  ;;  %s3466_s10 = int_to_ptr.vmem [resolvable:$true] %s1777_s10 }
  0xa1   : > { %v1979_v8 = vpack.c.bf16 %v563_v6, %v561_v5  ;;  %v565_v11 = vld [vmem:[#allocation5 + $0x248] sm:$0xff]  ;;  %1976 = vmatprep.subr.bf16.mxu0 %v1975_v3  ;;  %v567_v12 = vld [vmem:[#allocation5 + $0x258] sm:$0xff]  ;;  %v1981_v13 = vpack.c.bf16 %v562_v10, %v560_v9  ;;  %v564_v15 = vld [vmem:[#allocation5 + $0x240] sm:$0xff]  ;;  %s2584_s9 = scalar_lea.vmem %s3466_s10, 4096  ;;  %s2672_s22 = smov [#allocation11]  }
  0xa2   : > { %1978 = vmatpush1.bf16.msra.mxu0 %v1977_v7  ;;  %v1983_v14 = vpack.c.bf16 %v567_v12, %v565_v11  ;;  %v566_v16 = vld [vmem:[#allocation5 + $0x250] sm:$0xff]  ;;  %v569_v17 = vld [vmem:[#allocation5 + $0x268] sm:$0xff]  ;;  %v571_v18 = vld [vmem:[#allocation5 + $0x278] sm:$0xff]  ;;  %p2585_p4 = scmp.ne.s32.totalorder %s3466_s10, %s2584_s9  ;;  %s2588_s11 = sshll.u32 %s2672_s22, 4  ;;  %s2589_s11 = int_to_ptr.vmem [resolvable:$false] %s2588_s11 }
  0xa3   : > { %1980 = vmatprep.subr.bf16.mxu0 %v1979_v8  ;;  %v1985_v19 = vpack.c.bf16 %v566_v16, %v564_v15  ;;  %v1987_v20 = vpack.c.bf16 %v571_v18, %v569_v17  ;;  %v568_v21 = vld [vmem:[#allocation5 + $0x260] sm:$0xff]  ;;  %v570_v22 = vld [vmem:[#allocation5 + $0x270] sm:$0xff]  ;;  %v573_v23 = vld [vmem:[#allocation5 + $0x288] sm:$0xff]  ;;  %s2590_s28 = scalar_lea.vmem %s2589_s11, 8192  ;;  %p2591_p12 = scmp.lt.s32.totalorder %s3466_s10, %s2589_s11 }
  0xa4   : > { %v575_v24 = vld [vmem:[#allocation5 + $0x298] sm:$0xff]  ;;  %v1989_v25 = vpack.c.bf16 %v570_v22, %v568_v21  ;;  %v572_v27 = vld [vmem:[#allocation5 + $0x280] sm:$0xff]  ;;  %v574_v28 = vld [vmem:[#allocation5 + $0x290] sm:$0xff]  ;;  %p2586_p5 = pnand %p2585_p4, %p2872_p8  ;;  %p2592_p2 = scmp.lt.s32.totalorder %s2590_s28, %s2584_s9 }
  0xa5   : > { %v1991_v26 = vpack.c.bf16 %v575_v24, %v573_v23  ;;  %v577_v29 = vld [vmem:[#allocation5 + $0x2a8] sm:$0xff]  ;;  %v579_v30 = vld [vmem:[#allocation5 + $0x2b8] sm:$0xff]  ;;  %v1993_v31 = vpack.c.bf16 %v574_v28, %v572_v27  ;;  %v576_v33 = vld [vmem:[#allocation5 + $0x2a0] sm:$0xff] }
  0xa6   : > { %1982 = vmatpush1.bf16.msra.mxu0 %v1981_v13  ;;  %v1995_v32 = vpack.c.bf16 %v579_v30, %v577_v29  ;;  %v578_v34 = vld [vmem:[#allocation5 + $0x2b0] sm:$0xff]  ;;  %v581_v35 = vld [vmem:[#allocation5 + $0x2c8] sm:$0xff]  ;;  %v583_v36 = vld [vmem:[#allocation5 + $0x2d8] sm:$0xff]  ;;  %p2587_p7 = pneg %p2586_p5  ;;  %p2593_p1 = por %p2592_p2, %p2591_p12 }
  0xa7   : > { %1984 = vmatprep.subr.bf16.mxu0 %v1983_v14  ;;  %v1997_v37 = vpack.c.bf16 %v578_v34, %v576_v33  ;;  %v1999_v38 = vpack.c.bf16 %v583_v36, %v581_v35  ;;  %v580_v39 = vld [vmem:[#allocation5 + $0x2c0] sm:$0xff]  ;;  %v582_v40 = vld [vmem:[#allocation5 + $0x2d0] sm:$0xff]  ;;  %v303_v41 = vld [vmem:[%s2925_s8 + $0x18] sm:$0xff] }
  0xa8   : > { %v585_v42 = vld [vmem:[#allocation5 + $0x2e8] sm:$0xff]  ;;  %v587_v43 = vld [vmem:[#allocation5 + $0x2f8] sm:$0xff]  ;;  %1017 = vmatprep.mubr.f32.mxu0 %v303_v41  ;;  %v2001_v44 = vpack.c.bf16 %v582_v40, %v580_v39  ;;  %v584_v46 = vld [vmem:[#allocation5 + $0x2e0] sm:$0xff]  ;;  %p2594_p13 = pnand %p2593_p1, %p2587_p7 }
  0xa9   : > { %v2003_v45 = vpack.c.bf16 %v587_v43, %v585_v42  ;;  %v586_v47 = vld [vmem:[#allocation5 + $0x2f0] sm:$0xff]  ;;  %v589_v48 = vld [vmem:[#allocation5 + $0x308] sm:$0xff]  ;;  %v591_v49 = vld [vmem:[#allocation5 + $0x318] sm:$0xff] }
  0xaa   : > { %1986 = vmatpush1.bf16.msra.mxu0 %v1985_v19  ;;  %v2005_v50 = vpack.c.bf16 %v586_v47, %v584_v46  ;;  %v2007_v51 = vpack.c.bf16 %v591_v49, %v589_v48  ;;  %v588_v52 = vld [vmem:[#allocation5 + $0x300] sm:$0xff]  ;;  %v590_v53 = vld [vmem:[#allocation5 + $0x310] sm:$0xff]  ;;  %v593_v54 = vld [vmem:[#allocation5 + $0x328] sm:$0xff] }
  0xab   : > { %1988 = vmatprep.subr.bf16.mxu0 %v1987_v20  ;;  %v595_v55 = vld [vmem:[#allocation5 + $0x338] sm:$0xff]  ;;  %v2009_v56 = vpack.c.bf16 %v590_v53, %v588_v52  ;;  %v592_v58 = vld [vmem:[#allocation5 + $0x320] sm:$0xff]  ;;  %v594_v59 = vld [vmem:[#allocation5 + $0x330] sm:$0xff] }
  0xac   : > { %v2011_v57 = vpack.c.bf16 %v595_v55, %v593_v54  ;;  %v597_v60 = vld [vmem:[#allocation5 + $0x348] sm:$0xff]  ;;  %v599_v61 = vld [vmem:[#allocation5 + $0x358] sm:$0xff]  ;;  %v2013_v62 = vpack.c.bf16 %v594_v59, %v592_v58  ;;  %v596_v0 = vld [vmem:[#allocation5 + $0x340] sm:$0xff] }
  0xad   : > { %v2015_v63 = vpack.c.bf16 %v599_v61, %v597_v60  ;;  %v598_v1 = vld [vmem:[#allocation5 + $0x350] sm:$0xff]  ;;  %v601_v2 = vld [vmem:[#allocation5 + $0x368] sm:$0xff]  ;;  %v603_v3 = vld [vmem:[#allocation5 + $0x378] sm:$0xff] }
  0xae   : > { %1990 = vmatpush1.bf16.msra.mxu0 %v1989_v25  ;;  %v2017_v4 = vpack.c.bf16 %v598_v1, %v596_v0  ;;  %v2019_v5 = vpack.c.bf16 %v603_v3, %v601_v2  ;;  %v600_v6 = vld [vmem:[#allocation5 + $0x360] sm:$0xff]  ;;  %v602_v7 = vld [vmem:[#allocation5 + $0x370] sm:$0xff]  ;;  %v605_v8 = vld [vmem:[#allocation5 + $0x388] sm:$0xff] }
  0xaf   : > { %1992 = vmatprep.subr.bf16.mxu0 %v1991_v26  ;;  %v607_v9 = vld [vmem:[#allocation5 + $0x398] sm:$0xff]  ;;  %v493_v10 = vld [vmem:[#allocation5 + $0x8] sm:$0xff]  ;;  %v492_v12 = vld [vmem:[#allocation5] sm:$0xff]  ;;  %v2021_v14 = vpack.c.bf16 %v602_v7, %v600_v6 }
  0xb0   : > { %v495_v11 = vld [vmem:[#allocation5 + $0x18] sm:$0xff]  ;;  %v494_v13 = vld [vmem:[#allocation5 + $0x10] sm:$0xff]  ;;  %v604_v15 = vld [vmem:[#allocation5 + $0x380] sm:$0xff]  ;;  %v2023_v18 = vpack.c.bf16 %v607_v9, %v605_v8 }
  0xb1   : > { %v1911_v16 = vpack.c.bf16 %v495_v11, %v493_v10  ;;  %v1913_v17 = vpack.c.bf16 %v494_v13, %v492_v12  ;;  %v606_v19 = vld [vmem:[#allocation5 + $0x390] sm:$0xff]  ;;  %v609_v20 = vld [vmem:[#allocation5 + $0x3a8] sm:$0xff]  ;;  %v611_v21 = vld [vmem:[#allocation5 + $0x3b8] sm:$0xff] }
  0xb2   : > { %1994 = vmatpush1.bf16.msra.mxu0 %v1993_v31  ;;  %v497_v22 = vld [vmem:[#allocation5 + $0x28] sm:$0xff]  ;;  %v499_v23 = vld [vmem:[#allocation5 + $0x38] sm:$0xff]  ;;  %v496_v24 = vld [vmem:[#allocation5 + $0x20] sm:$0xff]  ;;  %v2025_v27 = vpack.c.bf16 %v606_v19, %v604_v15 }
  0xb3   : > { %1996 = vmatprep.subr.bf16.mxu0 %v1995_v32  ;;  %1912 = vmatprep.subr.bf16.mxu1 %v1911_v16  ;;  %v1915_v25 = vpack.c.bf16 %v499_v23, %v497_v22  ;;  %v498_v26 = vld [vmem:[#allocation5 + $0x30] sm:$0xff]  ;;  %v501_v29 = vld [vmem:[#allocation5 + $0x48] sm:$0xff]  ;;  %v503_v30 = vld [vmem:[#allocation5 + $0x58] sm:$0xff]  ;;  %v2027_v32 = vpack.c.bf16 %v611_v21, %v609_v20 }
  0xb4   : > { %1914 = vmatpush1.bf16.msra.mxu1 %v1913_v17  ;;  %v1917_v28 = vpack.c.bf16 %v498_v26, %v496_v24  ;;  %v500_v31 = vld [vmem:[#allocation5 + $0x40] sm:$0xff]  ;;  %v610_v34 = vld [vmem:[#allocation5 + $0x3b0] sm:$0xff]  ;;  %v1919_v35 = vpack.c.bf16 %v503_v30, %v501_v29  ;;  %v505_v40 = vld [vmem:[#allocation5 + $0x68] sm:$0xff] }
  0xb5   : > { %v608_v33 = vld [vmem:[#allocation5 + $0x3a0] sm:$0xff]  ;;  %1916 = vmatprep.subr.bf16.mxu1 %v1915_v25  ;;  %v502_v36 = vld [vmem:[#allocation5 + $0x50] sm:$0xff]  ;;  %v507_v41 = vld [vmem:[#allocation5 + $0x78] sm:$0xff] }
  0xb6   : > { %1998 = vmatpush1.bf16.msra.mxu0 %v1997_v37  ;;  %v613_v37 = vld [vmem:[#allocation5 + $0x3c8] sm:$0xff]  ;;  %v1921_v39 = vpack.c.bf16 %v502_v36, %v500_v31  ;;  %v2029_v42 = vpack.c.bf16 %v610_v34, %v608_v33  ;;  %v612_v43 = vld [vmem:[#allocation5 + $0x3c0] sm:$0xff]  ;;  %v506_v46 = vld [vmem:[#allocation5 + $0x70] sm:$0xff] }
  0xb7   : > { %2000 = vmatprep.subr.bf16.mxu0 %v1999_v38  ;;  %v615_v38 = vld [vmem:[#allocation5 + $0x3d8] sm:$0xff]  ;;  %v614_v48 = vld [vmem:[#allocation5 + $0x3d0] sm:$0xff]  ;;  %v509_v49 = vld [vmem:[#allocation5 + $0x88] sm:$0xff] }
  0xb8   : > { %1918 = vmatpush1.bf16.msra.mxu1 %v1917_v28  ;;  %v2031_v47 = vpack.c.bf16 %v615_v38, %v613_v37  ;;  %v619_v52 = vld [vmem:[#allocation5 + $0x3f8] sm:$0xff]  ;;  %v2033_v54 = vpack.c.bf16 %v614_v48, %v612_v43  ;;  %v616_v55 = vld [vmem:[#allocation5 + $0x3e0] sm:$0xff]  ;;  %v510_v58 = vld [vmem:[#allocation5 + $0x90] sm:$0xff] }
  0xb9   : > { %1920 = vmatprep.subr.bf16.mxu1 %v1919_v35  ;;  %v618_v60 = vld [vmem:[#allocation5 + $0x3f0] sm:$0xff]  ;;  %v513_v61 = vld [vmem:[#allocation5 + $0xa8] sm:$0xff]  ;;  %v623_v0 = vld [vmem:[#allocation5 + $0x418] sm:$0xff] }
  0xba   : > { %2002 = vmatpush1.bf16.msra.mxu0 %v2001_v44  ;;  %v1923_v44 = vpack.c.bf16 %v507_v41, %v505_v40  ;;  %v2037_v2 = vpack.c.bf16 %v618_v60, %v616_v55  ;;  %v620_v7 = vld [vmem:[#allocation5 + $0x400] sm:$0xff]  ;;  %v622_v8 = vld [vmem:[#allocation5 + $0x410] sm:$0xff]  ;;  %v625_v9 = vld [vmem:[#allocation5 + $0x428] sm:$0xff] }
  0xbb   : > { %2004 = vmatprep.subr.bf16.mxu0 %v2003_v45  ;;  %v504_v45 = vld [vmem:[#allocation5 + $0x60] sm:$0xff]  ;;  %v627_v10 = vld [vmem:[#allocation5 + $0x438] sm:$0xff]  ;;  %v517_v11 = vld [vmem:[#allocation5 + $0xc8] sm:$0xff]  ;;  %v2041_v15 = vpack.c.bf16 %v622_v8, %v620_v7 }
  0xbc   : > { %1922 = vmatpush1.bf16.msra.mxu1 %v1921_v39  ;;  %v1925_v53 = vpack.c.bf16 %v506_v46, %v504_v45  ;;  %v519_v12 = vld [vmem:[#allocation5 + $0xd8] sm:$0xff]  ;;  %v302_v13 = vld [vmem:[%s2925_s8 + $0x10] sm:$0xff]  ;;  %v309_v16 = vld [vmem:[%s2925_s8 + $0x48] sm:$0xff]  ;;  %v2043_v19 = vpack.c.bf16 %v627_v10, %v625_v9 }
  0xbd   : > { %1924 = vmatprep.subr.bf16.mxu1 %v1923_v44  ;;  %v516_v17 = vld [vmem:[#allocation5 + $0xc0] sm:$0xff]  ;;  %v626_v21 = vld [vmem:[#allocation5 + $0x430] sm:$0xff]  ;;  %v629_v22 = vld [vmem:[#allocation5 + $0x448] sm:$0xff]  ;;  %v1935_v23 = vpack.c.bf16 %v519_v12, %v517_v11 }
  0xbe   : > { %2006 = vmatpush1.bf16.msra.mxu0 %v2005_v50  ;;  %v511_v50 = vld [vmem:[#allocation5 + $0x98] sm:$0xff]  ;;  %v624_v20 = vld [vmem:[#allocation5 + $0x420] sm:$0xff]  ;;  %v521_v25 = vld [vmem:[#allocation5 + $0xe8] sm:$0xff] }
  0xbf   : > { %2008 = vmatprep.subr.bf16.mxu0 %v2007_v51  ;;  %v617_v51 = vld [vmem:[#allocation5 + $0x3e8] sm:$0xff]  ;;  %v631_v24 = vld [vmem:[#allocation5 + $0x458] sm:$0xff]  ;;  %v2045_v30 = vpack.c.bf16 %v626_v21, %v624_v20  ;;  %v520_v31 = vld [vmem:[#allocation5 + $0xe0] sm:$0xff] }
  0xc0   : > { %v2035_v59 = vpack.c.bf16 %v619_v52, %v617_v51  ;;  %1926 = vmatpush1.bf16.msra.mxu1 %v1925_v53  ;;  %v523_v26 = vld [vmem:[#allocation5 + $0xf8] sm:$0xff]  ;;  %v2047_v33 = vpack.c.bf16 %v631_v24, %v629_v22  ;;  %v628_v34 = vld [vmem:[#allocation5 + $0x440] sm:$0xff]  ;;  %v630_v35 = vld [vmem:[#allocation5 + $0x450] sm:$0xff] }
  0xc1   : > { %v315_v29 = vld [vmem:[%s2925_s8 + $0x78] sm:$0xff]  ;;  %v633_v36 = vld [vmem:[#allocation5 + $0x468] sm:$0xff]  ;;  %v1939_v37 = vpack.c.bf16 %v523_v26, %v521_v25  ;;  %v314_v41 = vld [vmem:[%s2925_s8 + $0x70] sm:$0xff]  ;;  %v2049_v44 = vpack.c.bf16 %v630_v35, %v628_v34 }
  0xc2   : > { %2010 = vmatpush1.bf16.msra.mxu0 %v2009_v56  ;;  %v1927_v56 = vpack.c.bf16 %v511_v50, %v509_v49  ;;  %v635_v38 = vld [vmem:[#allocation5 + $0x478] sm:$0xff]  ;;  %v525_v39 = vld [vmem:[#allocation5 + $0x108] sm:$0xff]  ;;  %v524_v45 = vld [vmem:[#allocation5 + $0x100] sm:$0xff] }
  0xc3   : > { %2012 = vmatprep.subr.bf16.mxu0 %v2011_v57  ;;  %v508_v57 = vld [vmem:[#allocation5 + $0x80] sm:$0xff]  ;;  %v527_v40 = vld [vmem:[#allocation5 + $0x118] sm:$0xff]  ;;  %v321_v43 = vld [vmem:[%s2925_s8 + $0xa8] sm:$0xff] }
  0xc4   : > { %v1929_v1 = vpack.c.bf16 %v510_v58, %v508_v57  ;;  %1928 = vmatprep.subr.bf16.mxu1 %v1927_v56  ;;  %v526_v46 = vld [vmem:[#allocation5 + $0x110] sm:$0xff]  ;;  %v632_v48 = vld [vmem:[#allocation5 + $0x460] sm:$0xff]  ;;  %v637_v50 = vld [vmem:[#allocation5 + $0x488] sm:$0xff]  ;;  %v1943_v51 = vpack.c.bf16 %v527_v40, %v525_v39 }
  0xc5   : > { %v634_v49 = vld [vmem:[#allocation5 + $0x470] sm:$0xff]  ;;  %v639_v52 = vld [vmem:[#allocation5 + $0x498] sm:$0xff]  ;;  %v529_v53 = vld [vmem:[#allocation5 + $0x128] sm:$0xff]  ;;  %v1945_v56 = vpack.c.bf16 %v526_v46, %v524_v45 }
  0xc6   : > { %2014 = vmatpush1.bf16.msra.mxu0 %v2013_v62  ;;  %v515_v62 = vld [vmem:[#allocation5 + $0xb8] sm:$0xff]  ;;  %1930 = vmatpush1.bf16.msra.mxu1 %v1929_v1  ;;  %v320_v55 = vld [vmem:[%s2925_s8 + $0xa0] sm:$0xff]  ;;  %v2053_v58 = vpack.c.bf16 %v634_v49, %v632_v48  ;;  %v530_v60 = vld [vmem:[#allocation5 + $0x130] sm:$0xff] }
  0xc7   : > { %2016 = vmatprep.subr.bf16.mxu0 %v2015_v63  ;;  %v621_v63 = vld [vmem:[#allocation5 + $0x408] sm:$0xff]  ;;  %v1931_v3 = vpack.c.bf16 %v515_v62, %v513_v61  ;;  %v327_v57 = vld [vmem:[%s2925_s8 + $0xd8] sm:$0xff]  ;;  %v2055_v61 = vpack.c.bf16 %v639_v52, %v637_v50  ;;  %v636_v62 = vld [vmem:[#allocation5 + $0x480] sm:$0xff] }
  0xc8   : > { %v2039_v6 = vpack.c.bf16 %v623_v0, %v621_v63  ;;  %v638_v63 = vld [vmem:[#allocation5 + $0x490] sm:$0xff]  ;;  %v641_v0 = vld [vmem:[#allocation5 + $0x4a8] sm:$0xff]  ;;  %v532_v9 = vld [vmem:[#allocation5 + $0x140] sm:$0xff] }
  0xc9   : > { %1932 = vmatprep.subr.bf16.mxu1 %v1931_v3  ;;  %v533_v3 = vld [vmem:[#allocation5 + $0x148] sm:$0xff]  ;;  %v2057_v8 = vpack.c.bf16 %v638_v63, %v636_v62  ;;  %v534_v10 = vld [vmem:[#allocation5 + $0x150] sm:$0xff]  ;;  %v640_v12 = vld [vmem:[#allocation5 + $0x4a0] sm:$0xff] }
  0xca   : > { %2018 = vmatpush1.bf16.msra.mxu0 %v2017_v4  ;;  %v512_v4 = vld [vmem:[#allocation5 + $0xa0] sm:$0xff]  ;;  %v333_v7 = vld [vmem:[%s2925_s8 + $0x108] sm:$0xff]  ;;  %v339_v20 = vld [vmem:[%s2925_s8 + $0x138] sm:$0xff]  ;;  %v1953_v21 = vpack.c.bf16 %v534_v10, %v532_v9 }
  0xcb   : > { %2020 = vmatprep.subr.bf16.mxu0 %v2019_v5  ;;  %v514_v5 = vld [vmem:[#allocation5 + $0xb0] sm:$0xff]  ;;  %v536_v24 = vld [vmem:[#allocation5 + $0x160] sm:$0xff]  ;;  %v655_v45 = vld [vmem:[#allocation5 + $0x518] sm:$0xff] }
  0xcc   : > { %v538_v25 = vld [vmem:[#allocation5 + $0x170] sm:$0xff]  ;;  %v545_v46 = vld [vmem:[#allocation5 + $0x1a8] sm:$0xff]  ;;  %v344_v48 = vld [vmem:[%s2925_s8 + $0x160] sm:$0xff] }
  0xcd   : > { %v338_v34 = vld [vmem:[%s2925_s8 + $0x130] sm:$0xff]  ;;  %v1957_v35 = vpack.c.bf16 %v538_v25, %v536_v24  ;;  %v351_v50 = vld [vmem:[%s2925_s8 + $0x198] sm:$0xff]  ;;  %v544_v52 = vld [vmem:[#allocation5 + $0x1a0] sm:$0xff] }
  0xce   : > { %2022 = vmatpush1.bf16.msra.mxu0 %v2021_v14  ;;  %v1933_v14 = vpack.c.bf16 %v514_v5, %v512_v4  ;;  %v535_v4 = vld [vmem:[#allocation5 + $0x158] sm:$0xff]  ;;  %v326_v5 = vld [vmem:[%s2925_s8 + $0xd0] sm:$0xff]  ;;  %v553_v10 = vld [vmem:[#allocation5 + $0x1e8] sm:$0xff] }
  0xcf   : > { %2024 = vmatprep.subr.bf16.mxu0 %v2023_v18  ;;  %v518_v18 = vld [vmem:[#allocation5 + $0xd0] sm:$0xff]  ;;  %v663_v9 = vld [vmem:[#allocation5 + $0x558] sm:$0xff] }
  0xd0   : > { %1934 = vmatpush1.bf16.msra.mxu1 %v1933_v14  ;;  %v1937_v28 = vpack.c.bf16 %v518_v18, %v516_v17  ;;  %v645_v14 = vld [vmem:[#allocation5 + $0x4c8] sm:$0xff]  ;;  %v539_v18 = vld [vmem:[#allocation5 + $0x178] sm:$0xff]  ;;  %v542_v39 = vld [vmem:[#allocation5 + $0x190] sm:$0xff] }
  0xd1   : > { %1936 = vmatprep.subr.bf16.mxu1 %v1935_v23  ;;  %v537_v17 = vld [vmem:[#allocation5 + $0x168] sm:$0xff]  ;;  %v644_v23 = vld [vmem:[#allocation5 + $0x4c0] sm:$0xff]  ;;  %v350_v62 = vld [vmem:[%s2925_s8 + $0x190] sm:$0xff] }
  0xd2   : > { %2026 = vmatpush1.bf16.msra.mxu0 %v2025_v27  ;;  %v308_v27 = vld [vmem:[%s2925_s8 + $0x40] sm:$0xff]  ;;  %v362_v25 = vld [vmem:[%s2925_s8 + $0x1f0] sm:$0xff] }
  0xd3   : > { %2028 = vmatprep.subr.bf16.mxu0 %v2027_v32  ;;  %v522_v32 = vld [vmem:[#allocation5 + $0xf0] sm:$0xff] }
  0xd4   : > { %1938 = vmatpush1.bf16.msra.mxu1 %v1937_v28  ;;  %v649_v28 = vld [vmem:[#allocation5 + $0x4e8] sm:$0xff] }
  0xd5   : > { %1940 = vmatprep.subr.bf16.mxu1 %v1939_v37 }
  0xd6   : > { %2030 = vmatpush1.bf16.msra.mxu0 %v2029_v42  ;;  %v1941_v42 = vpack.c.bf16 %v522_v32, %v520_v31  ;;  %v651_v31 = vld [vmem:[#allocation5 + $0x4f8] sm:$0xff]  ;;  %v541_v32 = vld [vmem:[#allocation5 + $0x188] sm:$0xff] }
  0xd7   : > { %2032 = vmatprep.subr.bf16.mxu0 %v2031_v47  ;;  %v2051_v47 = vpack.c.bf16 %v635_v38, %v633_v36  ;;  %v345_v36 = vld [vmem:[%s2925_s8 + $0x168] sm:$0xff]  ;;  %v540_v38 = vld [vmem:[#allocation5 + $0x180] sm:$0xff]  ;;  %v2067_v40 = vpack.c.bf16 %v651_v31, %v649_v28 }
  0xd8   : > { %1942 = vmatpush1.bf16.msra.mxu1 %v1941_v42  ;;  %v650_v42 = vld [vmem:[#allocation5 + $0x4f0] sm:$0xff]  ;;  %v1961_v49 = vpack.c.bf16 %v542_v39, %v540_v38  ;;  %v669_v31 = vld [vmem:[#allocation5 + $0x588] sm:$0xff]  ;;  %v668_v39 = vld [vmem:[#allocation5 + $0x580] sm:$0xff] }
  0xd9   : > { %1944 = vmatprep.subr.bf16.mxu1 %v1943_v51 }
  0xda   : > { %2034 = vmatpush1.bf16.msra.mxu0 %v2033_v54  ;;  %v531_v54 = vld [vmem:[#allocation5 + $0x138] sm:$0xff] }
  0xdb   : > { %2036 = vmatprep.subr.bf16.mxu0 %v2035_v59  ;;  %v528_v59 = vld [vmem:[#allocation5 + $0x120] sm:$0xff]  ;;  %v1947_v1 = vpack.c.bf16 %v531_v54, %v529_v53  ;;  %v546_v53 = vld [vmem:[#allocation5 + $0x1b0] sm:$0xff] }
  0xdc   : > { %1946 = vmatpush1.bf16.msra.mxu1 %v1945_v56  ;;  %v654_v56 = vld [vmem:[#allocation5 + $0x510] sm:$0xff]  ;;  %v1965_v63 = vpack.c.bf16 %v546_v53, %v544_v52  ;;  %v679_v52 = vld [vmem:[#allocation5 + $0x5d8] sm:$0xff]  ;;  %v312_v53 = vld [vmem:[%s2925_s8 + $0x60] sm:$0xff] }
  0xdd   : > { %1948 = vmatprep.subr.bf16.mxu1 %v1947_v1 }
  0xde   : > { %2038 = vmatpush1.bf16.msra.mxu0 %v2037_v2  ;;  %v643_v2 = vld [vmem:[#allocation5 + $0x4b8] sm:$0xff] }
  0xdf   : > { %2040 = vmatprep.subr.bf16.mxu0 %v2039_v6  ;;  %v1949_v6 = vpack.c.bf16 %v530_v60, %v528_v59  ;;  %v2059_v11 = vpack.c.bf16 %v643_v2, %v641_v0  ;;  %v659_v59 = vld [vmem:[#allocation5 + $0x538] sm:$0xff]  ;;  %v549_v60 = vld [vmem:[#allocation5 + $0x1c8] sm:$0xff]  ;;  %v548_v2 = vld [vmem:[#allocation5 + $0x1c0] sm:$0xff] }
  0xe0   : > { %v357_v0 = vld [vmem:[%s2925_s8 + $0x1c8] sm:$0xff] }
  0xe1   : > { %1018 = vmatmul.mubr.f32.vlgmr.msra.gmra.mrb[0].mxu0 %v302_v13  ;;  %v642_v13 = vld [vmem:[#allocation5 + $0x4b0] sm:$0xff]  ;;  %1950 = vmatpush1.bf16.msra.mxu1 %v1949_v6 }
  0xe2   : > { %2042 = vmatpush1.bf16.msra.mxu0 %v2041_v15  ;;  %1023 = vmatprep.mubr.f32.mxu0 %v309_v16  ;;  %v1951_v15 = vpack.c.bf16 %v535_v4, %v533_v3  ;;  %v647_v16 = vld [vmem:[#allocation5 + $0x4d8] sm:$0xff]  ;;  %v2061_v22 = vpack.c.bf16 %v642_v13, %v640_v12  ;;  %v550_v3 = vld [vmem:[#allocation5 + $0x1d0] sm:$0xff]  ;;  %v356_v13 = vld [vmem:[%s2925_s8 + $0x1c0] sm:$0xff] }
  0xe3   : > { %2044 = vmatprep.subr.bf16.mxu0 %v2043_v19  ;;  %v332_v19 = vld [vmem:[%s2925_s8 + $0x100] sm:$0xff]  ;;  %v2063_v26 = vpack.c.bf16 %v647_v16, %v645_v14  ;;  %v658_v6 = vld [vmem:[#allocation5 + $0x530] sm:$0xff]  ;;  %v1969_v12 = vpack.c.bf16 %v550_v3, %v548_v2  ;;  %v325_v2 = vld [vmem:[%s2925_s8 + $0xc8] sm:$0xff] }
  0xe4   : > { %1952 = vmatprep.subr.bf16.mxu1 %v1951_v15  ;;  %v552_v15 = vld [vmem:[#allocation5 + $0x1e0] sm:$0xff]  ;;  %v554_v16 = vld [vmem:[#allocation5 + $0x1f0] sm:$0xff]  ;;  %v393_v3 = vld [vmem:[%s2925_s8 + $0x2e8] sm:$0xff] }
  0xe5   : > { %1024 = vmatmul.mubr.f32.gmra.mrb[2].mxu0 %v308_v27  ;;  %v646_v27 = vld [vmem:[#allocation5 + $0x4d0] sm:$0xff]  ;;  %1954 = vmatpush1.bf16.msra.mxu1 %v1953_v21  ;;  %v1973_v24 = vpack.c.bf16 %v554_v16, %v552_v15  ;;  %v405_v15 = vld [vmem:[%s2925_s8 + $0x348] sm:$0xff]  ;;  %v336_v16 = vld [vmem:[%s2925_s8 + $0x120] sm:$0xff] }
  0xe6   : > { %1029 = vmatprep.mubr.f32.mxu0 %v315_v29  ;;  %2046 = vmatpush1.bf16.msra.mxu0 %v2045_v30  ;;  %v1955_v29 = vpack.c.bf16 %v539_v18, %v537_v17  ;;  %v301_v30 = vld [vmem:[%s2925_s8 + $0x8] sm:$0xff]  ;;  %v2065_v37 = vpack.c.bf16 %v646_v27, %v644_v23  ;;  %v363_v17 = vld [vmem:[%s2925_s8 + $0x1f8] sm:$0xff] }
  0xe7   : > { %2048 = vmatprep.subr.bf16.mxu0 %v2047_v33  ;;  %v543_v33 = vld [vmem:[#allocation5 + $0x198] sm:$0xff]  ;;  %760 = vmatprep.mubr.f32.mxu1 %v301_v30  ;;  %v369_v27 = vld [vmem:[%s2925_s8 + $0x228] sm:$0xff]  ;;  %v666_v30 = vld [vmem:[#allocation5 + $0x570] sm:$0xff] }
  0xe8   : > { %1956 = vmatprep.subr.bf16.mxu1 %v1955_v29  ;;  %v667_v23 = vld [vmem:[#allocation5 + $0x578] sm:$0xff]  ;;  %v664_v29 = vld [vmem:[#allocation5 + $0x560] sm:$0xff] }
  0xe9   : > { %1030 = vmatmul.mubr.f32.gmra.mrb[4].mxu0 %v314_v41  ;;  %v648_v41 = vld [vmem:[#allocation5 + $0x4e0] sm:$0xff]  ;;  %1958 = vmatpush1.bf16.msra.mxu1 %v1957_v35  ;;  %v2085_v35 = vpack.c.bf16 %v666_v30, %v664_v29  ;;  %v422_v29 = vld [vmem:[%s2925_s8 + $0x3d0] sm:$0xff]  ;;  %v361_v30 = vld [vmem:[%s2925_s8 + $0x1e8] sm:$0xff] }
  0xea   : > { %1035 = vmatprep.mubr.f32.mxu0 %v321_v43  ;;  %2050 = vmatpush1.bf16.msra.mxu0 %v2049_v44  ;;  %v653_v43 = vld [vmem:[#allocation5 + $0x508] sm:$0xff]  ;;  %v1959_v44 = vpack.c.bf16 %v543_v33, %v541_v32  ;;  %v2069_v51 = vpack.c.bf16 %v650_v42, %v648_v41  ;;  %v671_v32 = vld [vmem:[#allocation5 + $0x598] sm:$0xff]  ;;  %v300_v33 = vld [vmem:[%s2925_s8] sm:$0xff] }
  0xeb   : > { %2052 = vmatprep.subr.bf16.mxu0 %v2051_v47  ;;  %v547_v47 = vld [vmem:[#allocation5 + $0x1b8] sm:$0xff]  ;;  %v2071_v54 = vpack.c.bf16 %v655_v45, %v653_v43  ;;  %v2087_v38 = vpack.c.bf16 %v671_v32, %v669_v31  ;;  %v673_v41 = vld [vmem:[#allocation5 + $0x5a8] sm:$0xff]  ;;  %v306_v43 = vld [vmem:[%s2925_s8 + $0x30] sm:$0xff] }
  0xec   : > { %1960 = vmatprep.subr.bf16.mxu1 %v1959_v44  ;;  %v675_v42 = vld [vmem:[#allocation5 + $0x5b8] sm:$0xff]  ;;  %v374_v44 = vld [vmem:[%s2925_s8 + $0x250] sm:$0xff]  ;;  %v429_v31 = vld [vmem:[%s2925_s8 + $0x408] sm:$0xff] }
  0xed   : > { %1036 = vmatmul.mubr.f32.gmra.mrb[6].mxu0 %v320_v55  ;;  %v652_v55 = vld [vmem:[#allocation5 + $0x500] sm:$0xff]  ;;  %1962 = vmatpush1.bf16.msra.mxu1 %v1961_v49 }
  0xee   : > { %1041 = vmatprep.mubr.f32.mxu0 %v327_v57  ;;  %2054 = vmatpush1.bf16.msra.mxu0 %v2053_v58  ;;  %v657_v57 = vld [vmem:[#allocation5 + $0x528] sm:$0xff]  ;;  %v1963_v58 = vpack.c.bf16 %v547_v47, %v545_v46  ;;  %v2073_v1 = vpack.c.bf16 %v654_v56, %v652_v55  ;;  %v672_v49 = vld [vmem:[#allocation5 + $0x5a0] sm:$0xff]  ;;  %v319_v56 = vld [vmem:[%s2925_s8 + $0x98] sm:$0xff] }
  0xef   : > { %2056 = vmatprep.subr.bf16.mxu0 %v2055_v61  ;;  %v551_v61 = vld [vmem:[#allocation5 + $0x1d8] sm:$0xff]  ;;  %v2075_v4 = vpack.c.bf16 %v659_v59, %v657_v57  ;;  %v313_v46 = vld [vmem:[%s2925_s8 + $0x68] sm:$0xff]  ;;  %v676_v59 = vld [vmem:[#allocation5 + $0x5c0] sm:$0xff] }
  0xf0   : > { %1964 = vmatprep.subr.bf16.mxu1 %v1963_v58  ;;  %v381_v47 = vld [vmem:[%s2925_s8 + $0x288] sm:$0xff]  ;;  %v387_v57 = vld [vmem:[%s2925_s8 + $0x2b8] sm:$0xff]  ;;  %v360_v32 = vld [vmem:[%s2925_s8 + $0x1e0] sm:$0xff] }
  0xf1   : > { %1042 = vmatmul.mubr.f32.gmra.mrb[8].mxu0 %v326_v5  ;;  %v656_v5 = vld [vmem:[#allocation5 + $0x520] sm:$0xff]  ;;  %1966 = vmatpush1.bf16.msra.mxu1 %v1965_v63  ;;  %v318_v63 = vld [vmem:[%s2925_s8 + $0x90] sm:$0xff] }
  0xf2   : > { %1047 = vmatprep.mubr.f32.mxu0 %v333_v7  ;;  %2058 = vmatpush1.bf16.msra.mxu0 %v2057_v8  ;;  %v661_v7 = vld [vmem:[#allocation5 + $0x548] sm:$0xff]  ;;  %v1967_v8 = vpack.c.bf16 %v551_v61, %v549_v60  ;;  %v2077_v14 = vpack.c.bf16 %v658_v6, %v656_v5  ;;  %v678_v60 = vld [vmem:[#allocation5 + $0x5d0] sm:$0xff]  ;;  %v680_v5 = vld [vmem:[#allocation5 + $0x5e0] sm:$0xff] }
  0xf3   : > { %2060 = vmatprep.subr.bf16.mxu0 %v2059_v11  ;;  %v555_v11 = vld [vmem:[#allocation5 + $0x1f8] sm:$0xff]  ;;  %v2079_v18 = vpack.c.bf16 %v663_v9, %v661_v7  ;;  %v681_v61 = vld [vmem:[#allocation5 + $0x5e8] sm:$0xff]  ;;  %v682_v6 = vld [vmem:[#allocation5 + $0x5f0] sm:$0xff] }
  0xf4   : > { %1968 = vmatprep.subr.bf16.mxu1 %v1967_v8  ;;  %v1971_v21 = vpack.c.bf16 %v555_v11, %v553_v10  ;;  %v324_v7 = vld [vmem:[%s2925_s8 + $0xc0] sm:$0xff]  ;;  %v2101_v9 = vpack.c.bf16 %v682_v6, %v680_v5  ;;  %v331_v10 = vld [vmem:[%s2925_s8 + $0xf8] sm:$0xff]  ;;  %v402_v6 = vld [vmem:[%s2925_s8 + $0x330] sm:$0xff] }
  0xf5   : > { %1048 = vmatmul.mubr.f32.gmra.mrb[10].mxu0 %v332_v19  ;;  %v660_v19 = vld [vmem:[#allocation5 + $0x540] sm:$0xff]  ;;  %1970 = vmatpush1.bf16.msra.mxu1 %v1969_v12  ;;  %v399_v11 = vld [vmem:[%s2925_s8 + $0x318] sm:$0xff]  ;;  %v330_v12 = vld [vmem:[%s2925_s8 + $0xf0] sm:$0xff] }
  0xf6   : > { %1053 = vmatprep.mubr.f32.mxu0 %v339_v20  ;;  %2062 = vmatpush1.bf16.msra.mxu0 %v2061_v22  ;;  %v662_v20 = vld [vmem:[#allocation5 + $0x550] sm:$0xff]  ;;  %v665_v22 = vld [vmem:[#allocation5 + $0x568] sm:$0xff]  ;;  %v392_v8 = vld [vmem:[%s2925_s8 + $0x2e0] sm:$0xff] }
  0xf7   : > { %2064 = vmatprep.subr.bf16.mxu0 %v2063_v26  ;;  %v2081_v26 = vpack.c.bf16 %v662_v20, %v660_v19  ;;  %v2083_v28 = vpack.c.bf16 %v667_v23, %v665_v22  ;;  %1972 = vmatprep.subr.bf16.mxu1 %v1971_v21  ;;  %v411_v19 = vld [vmem:[%s2925_s8 + $0x378] sm:$0xff]  ;;  %v342_v20 = vld [vmem:[%s2925_s8 + $0x150] sm:$0xff]  ;;  %v349_v22 = vld [vmem:[%s2925_s8 + $0x188] sm:$0xff] }
  0xf8   : > { %v410_v21 = vld [vmem:[%s2925_s8 + $0x370] sm:$0xff]  ;;  %v417_v23 = vld [vmem:[%s2925_s8 + $0x3a8] sm:$0xff]  ;;  %v471_v5 = vld [vmem:[%s2925_s8 + $0x558] sm:$0xff] }
  0xf9   : > { %1054 = vmatmul.mubr.f32.gmra.mrb[12].mxu0 %v338_v34  ;;  %1974 = vmatpush1.bf16.msra.mxu1 %v1973_v24  ;;  %v368_v34 = vld [vmem:[%s2925_s8 + $0x220] sm:$0xff] }
  0xfa   : > { %1059 = vmatprep.mubr.f32.mxu0 %v345_v36  ;;  %2066 = vmatpush1.bf16.msra.mxu0 %v2065_v37  ;;  %v307_v36 = vld [vmem:[%s2925_s8 + $0x38] sm:$0xff]  ;;  %v348_v24 = vld [vmem:[%s2925_s8 + $0x180] sm:$0xff] }
  0xfb   : > { %2068 = vmatprep.subr.bf16.mxu0 %v2067_v40  ;;  %v375_v37 = vld [vmem:[%s2925_s8 + $0x258] sm:$0xff]  ;;  %v670_v40 = vld [vmem:[#allocation5 + $0x590] sm:$0xff] }
  0xfc   : > { %761 = vmatmul.mubr.f32.vlgmr.msra.gmra.mrb[0].mxu1 %v300_v33  ;;  %v2089_v45 = vpack.c.bf16 %v670_v40, %v668_v39  ;;  %v428_v33 = vld [vmem:[%s2925_s8 + $0x400] sm:$0xff]  ;;  %v441_v39 = vld [vmem:[%s2925_s8 + $0x468] sm:$0xff] }
  0xfd   : > { %1060 = vmatmul.mubr.f32.gmra.mrb[14].mxu0 %v344_v48  ;;  %766 = vmatprep.mubr.f32.mxu1 %v307_v36  ;;  %v2091_v48 = vpack.c.bf16 %v675_v42, %v673_v41  ;;  %v366_v36 = vld [vmem:[%s2925_s8 + $0x210] sm:$0xff]  ;;  %v372_v40 = vld [vmem:[%s2925_s8 + $0x240] sm:$0xff] }
  0xfe   : > { %1065 = vmatprep.mubr.f32.mxu0 %v351_v50  ;;  %2070 = vmatpush1.bf16.msra.mxu0 %v2069_v51  ;;  %v674_v50 = vld [vmem:[#allocation5 + $0x5b0] sm:$0xff]  ;;  %v677_v51 = vld [vmem:[#allocation5 + $0x5c8] sm:$0xff] }
  0xff   : > { %2072 = vmatprep.subr.bf16.mxu0 %v2071_v54  ;;  %v380_v54 = vld [vmem:[%s2925_s8 + $0x280] sm:$0xff]  ;;  %v2093_v55 = vpack.c.bf16 %v674_v50, %v672_v49  ;;  %v2095_v58 = vpack.c.bf16 %v679_v52, %v677_v51  ;;  %v1468_v42 = vld [vmem:[#allocation8 + $0x8] sm:$0xff] }
 0x100   : > { %767 = vmatmul.mubr.f32.gmra.mrb[2].mxu1 %v306_v43  ;;  %v1467_v41 = vld [vmem:[#allocation8] sm:$0xff]  ;;  %v446_v49 = vld [vmem:[%s2925_s8 + $0x490] sm:$0xff] }
 0x101   : > { %1066 = vmatmul.mubr.f32.gmra.mrb[16].mxu0 %v350_v62  ;;  %772 = vmatprep.mubr.f32.mxu1 %v313_v46  ;;  %v683_v62 = vld [vmem:[#allocation5 + $0x5f8] sm:$0xff]  ;;  %v440_v43 = vld [vmem:[%s2925_s8 + $0x460] sm:$0xff]  ;;  %v2104_v46 = vpack.c.bf16 %v1468_v42, %v1467_v41  ;;  %v385_v50 = vld [vmem:[%s2925_s8 + $0x2a8] sm:$0xff] }
 0x102   : > { %1071 = vmatprep.mubr.f32.mxu0 %v357_v0  ;;  %2074 = vmatpush1.bf16.msra.mxu0 %v2073_v1  ;;  %v386_v0 = vld [vmem:[%s2925_s8 + $0x2b0] sm:$0xff]  ;;  %v2097_v1 = vpack.c.bf16 %v678_v60, %v676_v59  ;;  %v453_v51 = vld [vmem:[%s2925_s8 + $0x4c8] sm:$0xff]  ;;  %v384_v52 = vld [vmem:[%s2925_s8 + $0x2a0] sm:$0xff] }
 0x103   : > { %2076 = vmatprep.subr.bf16.mxu0 %v2075_v4  ;;  %v2099_v4 = vpack.c.bf16 %v683_v62, %v681_v61  ;;  %v390_v59 = vld [vmem:[%s2925_s8 + $0x2d0] sm:$0xff]  ;;  %v397_v61 = vld [vmem:[%s2925_s8 + $0x308] sm:$0xff] }
 0x104   : > { %773 = vmatmul.mubr.f32.gmra.mrb[4].mxu1 %v312_v53  ;;  %v1469_v53 = vld [vmem:[#allocation8 + $0x10] sm:$0xff]  ;;  %v465_v62 = vld [vmem:[%s2925_s8 + $0x528] sm:$0xff] }
 0x105   : > { %1072 = vmatmul.mubr.f32.gmra.mrb[18].mxu0 %v356_v13  ;;  %778 = vmatprep.mubr.f32.mxu1 %v319_v56  ;;  %v398_v13 = vld [vmem:[%s2925_s8 + $0x310] sm:$0xff]  ;;  %v391_v56 = vld [vmem:[%s2925_s8 + $0x2d8] sm:$0xff]  ;;  %v317_v41 = vld [vmem:[%s2925_s8 + $0x88] sm:$0xff] }
 0x106   : > { %1077 = vmatprep.mubr.f32.mxu0 %v363_v17  ;;  %2078 = vmatpush1.bf16.msra.mxu0 %v2077_v14  ;;  %v337_v14 = vld [vmem:[%s2925_s8 + $0x128] sm:$0xff]  ;;  %v404_v17 = vld [vmem:[%s2925_s8 + $0x340] sm:$0xff]  ;;  %v458_v60 = vld [vmem:[%s2925_s8 + $0x4f0] sm:$0xff] }
 0x107   : > { %2080 = vmatprep.subr.bf16.mxu0 %v2079_v18  ;;  %v343_v18 = vld [vmem:[%s2925_s8 + $0x158] sm:$0xff] }
 0x108   : > { %779 = vmatmul.mubr.f32.gmra.mrb[6].mxu1 %v318_v63  ;;  %v396_v63 = vld [vmem:[%s2925_s8 + $0x300] sm:$0xff]  ;;  %v1481_v42 = vld [vmem:[#allocation8 + $0x70] sm:$0xff] }
 0x109   : > { %1078 = vmatmul.mubr.f32.gmra.mrb[20].mxu0 %v362_v25  ;;  %784 = vmatprep.mubr.f32.mxu1 %v325_v2  ;;  %v416_v25 = vld [vmem:[%s2925_s8 + $0x3a0] sm:$0xff] }
 0x10a   : > { %1083 = vmatprep.mubr.f32.mxu0 %v369_v27  ;;  %2082 = vmatpush1.bf16.msra.mxu0 %v2081_v26  ;;  %v355_v26 = vld [vmem:[%s2925_s8 + $0x1b8] sm:$0xff]  ;;  %v464_v2 = vld [vmem:[%s2925_s8 + $0x520] sm:$0xff] }
 0x10b   : > { %2084 = vmatprep.subr.bf16.mxu0 %v2083_v28  ;;  %v423_v27 = vld [vmem:[%s2925_s8 + $0x3d8] sm:$0xff]  ;;  %v354_v28 = vld [vmem:[%s2925_s8 + $0x1b0] sm:$0xff] }
 0x10c   : > { %785 = vmatmul.mubr.f32.gmra.mrb[8].mxu1 %v324_v7  ;;  %v470_v7 = vld [vmem:[%s2925_s8 + $0x550] sm:$0xff] }
 0x10d   : > { %1084 = vmatmul.mubr.f32.gmra.mrb[22].mxu0 %v368_v34  ;;  %790 = vmatprep.mubr.f32.mxu1 %v331_v10  ;;  %v367_v34 = vld [vmem:[%s2925_s8 + $0x218] sm:$0xff]  ;;  %v408_v10 = vld [vmem:[%s2925_s8 + $0x360] sm:$0xff] }
 0x10e   : > { %1089 = vmatprep.mubr.f32.mxu0 %v375_v37  ;;  %2086 = vmatpush1.bf16.msra.mxu0 %v2085_v35  ;;  %v435_v35 = vld [vmem:[%s2925_s8 + $0x438] sm:$0xff]  ;;  %v434_v37 = vld [vmem:[%s2925_s8 + $0x430] sm:$0xff] }
 0x10f   : > { %2088 = vmatprep.subr.bf16.mxu0 %v2087_v38  ;;  %v373_v38 = vld [vmem:[%s2925_s8 + $0x248] sm:$0xff] }
 0x110   : > { %791 = vmatmul.mubr.f32.gmra.mrb[10].mxu1 %v330_v12  ;;  %v1474_v12 = vld [vmem:[#allocation8 + $0x38] sm:$0xff] }
 0x111   : > { %1090 = vmatmul.mubr.f32.gmra.mrb[24].mxu0 %v374_v44  ;;  %796 = vmatprep.mubr.f32.mxu1 %v337_v14  ;;  %v379_v44 = vld [vmem:[%s2925_s8 + $0x278] sm:$0xff] }
 0x112   : > { %1095 = vmatprep.mubr.f32.mxu0 %v381_v47  ;;  %2090 = vmatpush1.bf16.msra.mxu0 %v2089_v45  ;;  %v2671_v45 = vmov 0.0|0.0   ;;  %v447_v47 = vld [vmem:[%s2925_s8 + $0x498] sm:$0xff] }
 0x113   : > { %2092 = vmatprep.subr.bf16.mxu0 %v2091_v48  ;;  %2103 = vmatprep.subr.bf16.mxu1 %v2671_v45  ;;  %v378_v48 = vld [vmem:[%s2925_s8 + $0x270] sm:$0xff]  ;;  %v415_v14 = vld [vmem:[%s2925_s8 + $0x398] sm:$0xff] }
 0x114   : > { %797 = vmatmul.mubr.f32.gmra.mrb[12].mxu1 %v336_v16  ;;  %v483_v16 = vld [vmem:[%s2925_s8 + $0x5b8] sm:$0xff] }
 0x115   : > { %1096 = vmatmul.mubr.f32.gmra.mrb[26].mxu0 %v380_v54  ;;  %802 = vmatprep.mubr.f32.mxu1 %v343_v18  ;;  %v1470_v54 = vld [vmem:[#allocation8 + $0x18] sm:$0xff]  ;;  %v482_v18 = vld [vmem:[%s2925_s8 + $0x5b0] sm:$0xff] }
 0x116   : > { %1101 = vmatprep.mubr.f32.mxu0 %v387_v57  ;;  %2094 = vmatpush1.bf16.msra.mxu0 %v2093_v55  ;;  %v452_v55 = vld [vmem:[%s2925_s8 + $0x4c0] sm:$0xff]  ;;  %v2107_v57 = vpack.c.bf16 %v1470_v54, %v1469_v53  ;;  %v322_v53 = vld [vmem:[%s2925_s8 + $0xb0] sm:$0xff]  ;;  %v451_v54 = vld [vmem:[%s2925_s8 + $0x4b8] sm:$0xff] }
 0x117   : > { %2096 = vmatprep.subr.bf16.mxu0 %v2095_v58  ;;  %2105 = vmatpush1.bf16.msra.mxu1 %v2104_v46  ;;  %v459_v58 = vld [vmem:[%s2925_s8 + $0x4f8] sm:$0xff]  ;;  %v316_v46 = vld [vmem:[%s2925_s8 + $0x80] sm:$0xff] }
 0x118   : > { %803 = vmatmul.mubr.f32.gmra.mrb[14].mxu1 %v342_v20  ;;  %2106 = vmatprep.subr.bf16.mxu1 %v2671_v45  ;;  %v489_v20 = vld [vmem:[%s2925_s8 + $0x5e8] sm:$0xff] }
 0x119   : > { %1102 = vmatmul.mubr.f32.gmra.mrb[28].mxu0 %v386_v0  ;;  %808 = vmatprep.mubr.f32.mxu1 %v349_v22  ;;  %v1471_v0 = vld [vmem:[#allocation8 + $0x20] sm:$0xff] }
 0x11a   : > { %1107 = vmatprep.mubr.f32.mxu0 %v393_v3  ;;  %2098 = vmatpush1.bf16.msra.mxu0 %v2097_v1  ;;  %v1472_v1 = vld [vmem:[#allocation8 + $0x28] sm:$0xff]  ;;  %v403_v3 = vld [vmem:[%s2925_s8 + $0x338] sm:$0xff]  ;;  %v1475_v22 = vld [vmem:[#allocation8 + $0x40] sm:$0xff] }
 0x11b   : > { %2100 = vmatprep.subr.bf16.mxu0 %v2099_v4  ;;  %2108 = vmatpush1.bf16.msra.mxu1 %v2107_v57  ;;  %v2110_v4 = vpack.c.bf16 %v1472_v1, %v1471_v0  ;;  %v1485_v57 = vld [vmem:[#allocation8 + $0x90] sm:$0xff]  ;;  %v1487_v0 = vld [vmem:[#allocation8 + $0xa0] sm:$0xff]  ;;  %v1488_v1 = vld [vmem:[#allocation8 + $0xa8] sm:$0xff] }
 0x11c   : > { %809 = vmatmul.mubr.f32.gmra.mrb[16].mxu1 %v348_v24  ;;  %2109 = vmatprep.subr.bf16.mxu1 %v2671_v45  ;;  %v488_v24 = vld [vmem:[%s2925_s8 + $0x5e0] sm:$0xff] }
 0x11d   : > { %1108 = vmatmul.mubr.f32.gmra.mrb[30].mxu0 %v392_v8  ;;  %814 = vmatprep.mubr.f32.mxu1 %v355_v26  ;;  %v409_v8 = vld [vmem:[%s2925_s8 + $0x368] sm:$0xff] }
 0x11e   : > { %1113 = vmatprep.mubr.f32.mxu0 %v399_v11  ;;  %2102 = vmatpush1.bf16.msra.mxu0 %v2101_v9  ;;  %v477_v9 = vld [vmem:[%s2925_s8 + $0x588] sm:$0xff]  ;;  %v1473_v11 = vld [vmem:[#allocation8 + $0x30] sm:$0xff] }
 0x11f   : > { %2111 = vmatpush1.bf16.msra.mxu1 %v2110_v4  ;;  %v463_v4 = vld [vmem:[%s2925_s8 + $0x518] sm:$0xff] }
 0x120   : > { %815 = vmatmul.mubr.f32.gmra.mrb[18].mxu1 %v354_v28  ;;  %2112 = vmatprep.subr.bf16.mxu1 %v2671_v45  ;;  %v426_v28 = vld [vmem:[%s2925_s8 + $0x3f0] sm:$0xff] }
 0x121   : > { %1114 = vmatmul.mubr.f32.gmra.mrb[32].mxu0 %v398_v13  ;;  %820 = vmatprep.mubr.f32.mxu1 %v361_v30  ;;  %v476_v13 = vld [vmem:[%s2925_s8 + $0x580] sm:$0xff] }
 0x122   : > { %1119 = vmatprep.mubr.f32.mxu0 %v405_v15  ;;  %v2113_v15 = vpack.c.bf16 %v1474_v12, %v1473_v11  ;;  %v1478_v30 = vld [vmem:[#allocation8 + $0x58] sm:$0xff]  ;;  %v469_v11 = vld [vmem:[%s2925_s8 + $0x548] sm:$0xff] }
 0x124   : > { %821 = vmatmul.mubr.f32.gmra.mrb[20].mxu1 %v360_v32  ;;  %v433_v32 = vld [vmem:[%s2925_s8 + $0x428] sm:$0xff] }
 0x125   : > { %1120 = vmatmul.mubr.f32.gmra.mrb[34].mxu0 %v404_v17  ;;  %826 = vmatprep.mubr.f32.mxu1 %v367_v34  ;;  %v414_v17 = vld [vmem:[%s2925_s8 + $0x390] sm:$0xff]  ;;  %v311_v34 = vld [vmem:[%s2925_s8 + $0x58] sm:$0xff] }
 0x126   : > { %1125 = vmatprep.mubr.f32.mxu0 %v411_v19  ;;  %v421_v19 = vld [vmem:[%s2925_s8 + $0x3c8] sm:$0xff]  ;;  %2114 = vmatpush1.bf16.msra.mxu1 %v2113_v15 }
 0x127   : > { %2115 = vmatprep.subr.bf16.mxu1 %v2671_v45  ;;  %v1492_v15 = vld [vmem:[#allocation8 + $0xc8] sm:$0xff] }
 0x128   : > { %827 = vmatmul.mubr.f32.gmra.mrb[22].mxu1 %v366_v36  ;;  %v1480_v36 = vld [vmem:[#allocation8 + $0x68] sm:$0xff] }
 0x129   : > { %1126 = vmatmul.mubr.f32.gmra.mrb[36].mxu0 %v410_v21  ;;  %832 = vmatprep.mubr.f32.mxu1 %v373_v38  ;;  %v420_v21 = vld [vmem:[%s2925_s8 + $0x3c0] sm:$0xff]  ;;  %v310_v38 = vld [vmem:[%s2925_s8 + $0x50] sm:$0xff] }
 0x12a   : > { %1131 = vmatprep.mubr.f32.mxu0 %v417_v23  ;;  %v1476_v23 = vld [vmem:[#allocation8 + $0x48] sm:$0xff] }
 0x12b   : > { %v2116_v26 = vpack.c.bf16 %v1476_v23, %v1475_v22  ;;  %v1494_v22 = vld [vmem:[#allocation8 + $0xd8] sm:$0xff]  ;;  %v474_v23 = vld [vmem:[%s2925_s8 + $0x570] sm:$0xff] }
 0x12c   : > { %833 = vmatmul.mubr.f32.gmra.mrb[24].mxu1 %v372_v40 }
 0x12d   : > { %1132 = vmatmul.mubr.f32.gmra.mrb[38].mxu0 %v416_v25  ;;  %838 = vmatprep.mubr.f32.mxu1 %v379_v44  ;;  %v427_v25 = vld [vmem:[%s2925_s8 + $0x3f8] sm:$0xff]  ;;  %v438_v44 = vld [vmem:[%s2925_s8 + $0x450] sm:$0xff] }
 0x12e   : > { %1137 = vmatprep.mubr.f32.mxu0 %v423_v27  ;;  %v305_v27 = vld [vmem:[%s2925_s8 + $0x28] sm:$0xff]  ;;  %2117 = vmatpush1.bf16.msra.mxu1 %v2116_v26 }
 0x12f   : > { %2118 = vmatprep.subr.bf16.mxu1 %v2671_v45 }
 0x130   : > { %839 = vmatmul.mubr.f32.gmra.mrb[26].mxu1 %v378_v48 }
 0x131   : > { %1138 = vmatmul.mubr.f32.gmra.mrb[40].mxu0 %v422_v29  ;;  %844 = vmatprep.mubr.f32.mxu1 %v385_v50  ;;  %v1477_v29 = vld [vmem:[#allocation8 + $0x50] sm:$0xff]  ;;  %v1483_v50 = vld [vmem:[#allocation8 + $0x80] sm:$0xff] }
 0x132   : > { %1143 = vmatprep.mubr.f32.mxu0 %v429_v31  ;;  %v304_v31 = vld [vmem:[%s2925_s8 + $0x20] sm:$0xff] }
 0x134   : > { %845 = vmatmul.mubr.f32.gmra.mrb[28].mxu1 %v384_v52  ;;  %v444_v52 = vld [vmem:[%s2925_s8 + $0x480] sm:$0xff] }
 0x135   : > { %1144 = vmatmul.mubr.f32.gmra.mrb[42].mxu0 %v428_v33  ;;  %850 = vmatprep.mubr.f32.mxu1 %v391_v56  ;;  %v2119_v33 = vpack.c.bf16 %v1478_v30, %v1477_v29  ;;  %v329_v56 = vld [vmem:[%s2925_s8 + $0xe8] sm:$0xff]  ;;  %v480_v30 = vld [vmem:[%s2925_s8 + $0x5a0] sm:$0xff] }
 0x136   : > { %1149 = vmatprep.mubr.f32.mxu0 %v435_v35  ;;  %v1479_v35 = vld [vmem:[#allocation8 + $0x60] sm:$0xff]  ;;  %v1496_v29 = vld [vmem:[#allocation8 + $0xe8] sm:$0xff] }
 0x137   : > { %2120 = vmatpush1.bf16.msra.mxu1 %v2119_v33  ;;  %v2122_v40 = vpack.c.bf16 %v1480_v36, %v1479_v35  ;;  %v1497_v35 = vld [vmem:[#allocation8 + $0xf0] sm:$0xff]  ;;  %v1498_v36 = vld [vmem:[#allocation8 + $0xf8] sm:$0xff] }
 0x138   : > { %851 = vmatmul.mubr.f32.gmra.mrb[30].mxu1 %v390_v59  ;;  %2121 = vmatprep.subr.bf16.mxu1 %v2671_v45  ;;  %v450_v59 = vld [vmem:[%s2925_s8 + $0x4b0] sm:$0xff] }
 0x139   : > { %1150 = vmatmul.mubr.f32.gmra.mrb[44].mxu0 %v434_v37  ;;  %856 = vmatprep.mubr.f32.mxu1 %v397_v61  ;;  %v432_v37 = vld [vmem:[%s2925_s8 + $0x420] sm:$0xff]  ;;  %v457_v61 = vld [vmem:[%s2925_s8 + $0x4e8] sm:$0xff] }
 0x13a   : > { %1155 = vmatprep.mubr.f32.mxu0 %v441_v39  ;;  %v439_v39 = vld [vmem:[%s2925_s8 + $0x458] sm:$0xff] }
 0x13b   : > { %2123 = vmatpush1.bf16.msra.mxu1 %v2122_v40  ;;  %v371_v40 = vld [vmem:[%s2925_s8 + $0x238] sm:$0xff] }
 0x13c   : > { %857 = vmatmul.mubr.f32.gmra.mrb[32].mxu1 %v396_v63  ;;  %2124 = vmatprep.subr.bf16.mxu1 %v2671_v45  ;;  %v335_v63 = vld [vmem:[%s2925_s8 + $0x118] sm:$0xff] }
 0x13d   : > { %1156 = vmatmul.mubr.f32.gmra.mrb[46].mxu0 %v440_v43  ;;  %862 = vmatprep.mubr.f32.mxu1 %v403_v3  ;;  %v1482_v43 = vld [vmem:[#allocation8 + $0x78] sm:$0xff]  ;;  %v334_v3 = vld [vmem:[%s2925_s8 + $0x110] sm:$0xff] }
 0x13e   : > { %1161 = vmatprep.mubr.f32.mxu0 %v447_v47  ;;  %v445_v47 = vld [vmem:[%s2925_s8 + $0x488] sm:$0xff]  ;;  %v2125_v48 = vpack.c.bf16 %v1482_v43, %v1481_v42  ;;  %v376_v43 = vld [vmem:[%s2925_s8 + $0x260] sm:$0xff] }
 0x13f   : > { %v377_v42 = vld [vmem:[%s2925_s8 + $0x268] sm:$0xff] }
 0x140   : > { %863 = vmatmul.mubr.f32.gmra.mrb[34].mxu1 %v402_v6  ;;  %v341_v6 = vld [vmem:[%s2925_s8 + $0x148] sm:$0xff] }
 0x141   : > { %1162 = vmatmul.mubr.f32.gmra.mrb[48].mxu0 %v446_v49  ;;  %868 = vmatprep.mubr.f32.mxu1 %v409_v8  ;;  %v323_v49 = vld [vmem:[%s2925_s8 + $0xb8] sm:$0xff] }
 0x142   : > { %1167 = vmatprep.mubr.f32.mxu0 %v453_v51  ;;  %v1484_v51 = vld [vmem:[#allocation8 + $0x88] sm:$0xff]  ;;  %2126 = vmatpush1.bf16.msra.mxu1 %v2125_v48  ;;  %v1490_v8 = vld [vmem:[#allocation8 + $0xb8] sm:$0xff] }
 0x143   : > { %2127 = vmatprep.subr.bf16.mxu1 %v2671_v45  ;;  %v395_v48 = vld [vmem:[%s2925_s8 + $0x2f8] sm:$0xff] }
 0x144   : > { %869 = vmatmul.mubr.f32.gmra.mrb[36].mxu1 %v408_v10  ;;  %v340_v10 = vld [vmem:[%s2925_s8 + $0x140] sm:$0xff] }
 0x145   : > { %1168 = vmatmul.mubr.f32.gmra.mrb[50].mxu0 %v452_v55  ;;  %874 = vmatprep.mubr.f32.mxu1 %v415_v14  ;;  %v2128_v55 = vpack.c.bf16 %v1484_v51, %v1483_v50  ;;  %v1491_v14 = vld [vmem:[#allocation8 + $0xc0] sm:$0xff] }
 0x146   : > { %1173 = vmatprep.mubr.f32.mxu0 %v459_v58  ;;  %v1486_v58 = vld [vmem:[#allocation8 + $0x98] sm:$0xff]  ;;  %v401_v50 = vld [vmem:[%s2925_s8 + $0x328] sm:$0xff] }
 0x147   : > { %2129 = vmatpush1.bf16.msra.mxu1 %v2128_v55  ;;  %v400_v51 = vld [vmem:[%s2925_s8 + $0x320] sm:$0xff] }
 0x148   : > { %875 = vmatmul.mubr.f32.gmra.mrb[38].mxu1 %v414_v17  ;;  %2130 = vmatprep.subr.bf16.mxu1 %v2671_v45  ;;  %v346_v17 = vld [vmem:[%s2925_s8 + $0x170] sm:$0xff]  ;;  %v412_v55 = vld [vmem:[%s2925_s8 + $0x380] sm:$0xff] }
 0x149   : > { %1174 = vmatmul.mubr.f32.gmra.mrb[52].mxu0 %v458_v60  ;;  %880 = vmatprep.mubr.f32.mxu1 %v421_v19  ;;  %v328_v60 = vld [vmem:[%s2925_s8 + $0xe0] sm:$0xff]  ;;  %v2140_v19 = vpack.c.bf16 %v1492_v15, %v1491_v14  ;;  %v485_v14 = vld [vmem:[%s2925_s8 + $0x5c8] sm:$0xff] }
 0x14a   : > { %1179 = vmatprep.mubr.f32.mxu0 %v465_v62  ;;  %v2131_v62 = vpack.c.bf16 %v1486_v58, %v1485_v57  ;;  %v418_v57 = vld [vmem:[%s2925_s8 + $0x3b0] sm:$0xff]  ;;  %v425_v58 = vld [vmem:[%s2925_s8 + $0x3e8] sm:$0xff]  ;;  %v484_v15 = vld [vmem:[%s2925_s8 + $0x5c0] sm:$0xff] }
 0x14c   : > { %881 = vmatmul.mubr.f32.gmra.mrb[40].mxu1 %v420_v21  ;;  %v1493_v21 = vld [vmem:[#allocation8 + $0xd0] sm:$0xff] }
 0x14d   : > { %1180 = vmatmul.mubr.f32.gmra.mrb[54].mxu0 %v464_v2  ;;  %886 = vmatprep.mubr.f32.mxu1 %v427_v25  ;;  %v456_v2 = vld [vmem:[%s2925_s8 + $0x4e0] sm:$0xff]  ;;  %v481_v25 = vld [vmem:[%s2925_s8 + $0x5a8] sm:$0xff]  ;;  %v2143_v26 = vpack.c.bf16 %v1494_v22, %v1493_v21 }
 0x14e   : > { %1185 = vmatprep.mubr.f32.mxu0 %v471_v5  ;;  %2132 = vmatpush1.bf16.msra.mxu1 %v2131_v62  ;;  %v2134_v5 = vpack.c.bf16 %v1488_v1, %v1487_v0  ;;  %v437_v62 = vld [vmem:[%s2925_s8 + $0x448] sm:$0xff]  ;;  %v443_v0 = vld [vmem:[%s2925_s8 + $0x478] sm:$0xff]  ;;  %v442_v1 = vld [vmem:[%s2925_s8 + $0x470] sm:$0xff] }
 0x14f   : > { %2133 = vmatprep.subr.bf16.mxu1 %v2671_v45 }
 0x150   : > { %887 = vmatmul.mubr.f32.gmra.mrb[42].mxu1 %v426_v28  ;;  %v1495_v28 = vld [vmem:[#allocation8 + $0xe0] sm:$0xff] }
 0x151   : > { %1186 = vmatmul.mubr.f32.gmra.mrb[56].mxu0 %v470_v7  ;;  %892 = vmatprep.mubr.f32.mxu1 %v433_v32  ;;  %v1489_v7 = vld [vmem:[#allocation8 + $0xb0] sm:$0xff]  ;;  %v2146_v33 = vpack.c.bf16 %v1496_v29, %v1495_v28 }
 0x152   : > { %1191 = vmatprep.mubr.f32.mxu0 %v477_v9  ;;  %v462_v9 = vld [vmem:[%s2925_s8 + $0x510] sm:$0xff]  ;;  %2135 = vmatpush1.bf16.msra.mxu1 %v2134_v5  ;;  %v2137_v12 = vpack.c.bf16 %v1490_v8, %v1489_v7  ;;  %v487_v32 = vld [vmem:[%s2925_s8 + $0x5d8] sm:$0xff]  ;;  %v460_v7 = vld [vmem:[%s2925_s8 + $0x500] sm:$0xff] }
 0x153   : > { %2136 = vmatprep.subr.bf16.mxu1 %v2671_v45  ;;  %v454_v5 = vld [vmem:[%s2925_s8 + $0x4d0] sm:$0xff]  ;;  %v467_v8 = vld [vmem:[%s2925_s8 + $0x538] sm:$0xff] }
 0x154   : > { %893 = vmatmul.mubr.f32.gmra.mrb[44].mxu1 %v432_v37  ;;  %v486_v37 = vld [vmem:[%s2925_s8 + $0x5d0] sm:$0xff] }
 0x155   : > { %1192 = vmatmul.mubr.f32.gmra.mrb[58].mxu0 %v476_v13  ;;  %898 = vmatprep.mubr.f32.mxu1 %v439_v39  ;;  %v347_v13 = vld [vmem:[%s2925_s8 + $0x178] sm:$0xff]  ;;  %v2149_v39 = vpack.c.bf16 %v1498_v36, %v1497_v35 }
 0x156   : > { %1197 = vmatprep.mubr.f32.mxu0 %v483_v16  ;;  %v468_v16 = vld [vmem:[%s2925_s8 + $0x540] sm:$0xff]  ;;  %2138 = vmatpush1.bf16.msra.mxu1 %v2137_v12  ;;  %v479_v12 = vld [vmem:[%s2925_s8 + $0x598] sm:$0xff] }
 0x157   : > { %2139 = vmatprep.subr.bf16.mxu1 %v2671_v45 }
 0x158   : > { %899 = vmatmul.mubr.f32.gmra.mrb[46].mxu1 %v438_v44  ;;  %v383_v44 = vld [vmem:[%s2925_s8 + $0x298] sm:$0xff] }
 0x159   : > { %1198 = vmatmul.mubr.f32.gmra.mrb[60].mxu0 %v482_v18  ;;  %904 = vmatprep.mubr.f32.mxu1 %v445_v47  ;;  %v475_v18 = vld [vmem:[%s2925_s8 + $0x578] sm:$0xff]  ;;  %v388_v47 = vld [vmem:[%s2925_s8 + $0x2c0] sm:$0xff] }
 0x15a   : > { %1203 = vmatprep.mubr.f32.mxu0 %v489_v20  ;;  %v353_v20 = vld [vmem:[%s2925_s8 + $0x1a8] sm:$0xff]  ;;  %2141 = vmatpush1.bf16.msra.mxu1 %v2140_v19 }
 0x15b   : > { %2142 = vmatprep.subr.bf16.mxu1 %v2671_v45 }
 0x15c   : > { %905 = vmatmul.mubr.f32.gmra.mrb[48].mxu1 %v444_v52  ;;  %v407_v52 = vld [vmem:[%s2925_s8 + $0x358] sm:$0xff] }
 0x15d   : > { %1204 = vmatmul.mubr.f32.gmra.mrb[62].mxu0 %v488_v24  ;;  %910 = vmatprep.mubr.f32.mxu1 %v451_v54  ;;  %v352_v24 = vld [vmem:[%s2925_s8 + $0x1a0] sm:$0xff]  ;;  %v413_v54 = vld [vmem:[%s2925_s8 + $0x388] sm:$0xff] }
 0x15e   : > { %1274 = vmatprep.mubr.f32.mxu0 %v305_v27  ;;  %v359_v27 = vld [vmem:[%s2925_s8 + $0x1d8] sm:$0xff]  ;;  %2144 = vmatpush1.bf16.msra.mxu1 %v2143_v26 }
 0x15f   : > { %2145 = vmatprep.subr.bf16.mxu1 %v2671_v45 }
 0x160   : > { %911 = vmatmul.mubr.f32.gmra.mrb[50].mxu1 %v450_v59  ;;  %v424_v59 = vld [vmem:[%s2925_s8 + $0x3e0] sm:$0xff] }
 0x161   : > { %1275 = vmatmul.mubr.f32.vlgmr.msra.gmra.mrb[0].mxu0 %v304_v31  ;;  %916 = vmatprep.mubr.f32.mxu1 %v457_v61  ;;  %v358_v31 = vld [vmem:[%s2925_s8 + $0x1d0] sm:$0xff] }
 0x162   : > { %1280 = vmatprep.mubr.f32.mxu0 %v311_v34  ;;  %v365_v34 = vld [vmem:[%s2925_s8 + $0x208] sm:$0xff]  ;;  %2147 = vmatpush1.bf16.msra.mxu1 %v2146_v33  ;;  %v430_v61 = vld [vmem:[%s2925_s8 + $0x410] sm:$0xff] }
 0x163   : > { %2148 = vmatprep.subr.bf16.mxu1 %v2671_v45  ;;  %v389_v45 = vld [vmem:[%s2925_s8 + $0x2c8] sm:$0xff] }
 0x164   : > { %917 = vmatmul.mubr.f32.gmra.mrb[52].mxu1 %v456_v2  ;;  %v449_v2 = vld [vmem:[%s2925_s8 + $0x4a8] sm:$0xff] }
 0x165   : > { %1281 = vmatmul.mubr.f32.gmra.mrb[2].mxu0 %v310_v38  ;;  %922 = vmatprep.mubr.f32.mxu1 %v463_v4  ;;  %v364_v38 = vld [vmem:[%s2925_s8 + $0x200] sm:$0xff]  ;;  %v455_v4 = vld [vmem:[%s2925_s8 + $0x4d8] sm:$0xff] }
 0x166   : > { %1286 = vmatprep.mubr.f32.mxu0 %v317_v41  ;;  %v370_v41 = vld [vmem:[%s2925_s8 + $0x230] sm:$0xff]  ;;  %2150 = vmatpush1.bf16.msra.mxu1 %v2149_v39 }
 0x168   : > { %923 = vmatmul.mubr.f32.gmra.mrb[54].mxu1 %v462_v9  ;;  %v466_v9 = vld [vmem:[%s2925_s8 + $0x530] sm:$0xff] }
 0x169   : > { %1287 = vmatmul.mubr.f32.gmra.mrb[4].mxu0 %v316_v46  ;;  %928 = vmatprep.mubr.f32.mxu1 %v469_v11  ;;  %v382_v46 = vld [vmem:[%s2925_s8 + $0x290] sm:$0xff]  ;;  %v472_v11 = vld [vmem:[%s2925_s8 + $0x560] sm:$0xff] }
 0x16a   : > { %1292 = vmatprep.mubr.f32.mxu0 %v323_v49  ;;  %v394_v49 = vld [vmem:[%s2925_s8 + $0x2f0] sm:$0xff] }
 0x16c   : > { %929 = vmatmul.mubr.f32.gmra.mrb[56].mxu1 %v468_v16  ;;  %v491_v16 = vld [vmem:[%s2925_s8 + $0x5f8] sm:$0xff] }
 0x16d   : > { %1293 = vmatmul.mubr.f32.gmra.mrb[6].mxu0 %v322_v53  ;;  %934 = vmatprep.mubr.f32.mxu1 %v475_v18  ;;  %v406_v53 = vld [vmem:[%s2925_s8 + $0x350] sm:$0xff] }
 0x16e   : > { %1298 = vmatprep.mubr.f32.mxu0 %v329_v56  ;;  %v419_v56 = vld [vmem:[%s2925_s8 + $0x3b8] sm:$0xff] }
 0x170   : > { %935 = vmatmul.mubr.f32.gmra.mrb[58].mxu1 %v474_v23 }
 0x171   : > { %1299 = vmatmul.mubr.f32.gmra.mrb[8].mxu0 %v328_v60  ;;  %940 = vmatprep.mubr.f32.mxu1 %v481_v25  ;;  %v431_v60 = vld [vmem:[%s2925_s8 + $0x418] sm:$0xff] }
 0x172   : > { %1304 = vmatprep.mubr.f32.mxu0 %v335_v63  ;;  %v436_v63 = vld [vmem:[%s2925_s8 + $0x440] sm:$0xff] }
 0x174   : > { %941 = vmatmul.mubr.f32.gmra.mrb[60].mxu1 %v480_v30 }
 0x175   : > { %1305 = vmatmul.mubr.f32.gmra.mrb[10].mxu0 %v334_v3  ;;  %946 = vmatprep.mubr.f32.mxu1 %v487_v32  ;;  %v448_v3 = vld [vmem:[%s2925_s8 + $0x4a0] sm:$0xff] }
 0x176   : > { %1310 = vmatprep.mubr.f32.mxu0 %v341_v6  ;;  %v461_v6 = vld [vmem:[%s2925_s8 + $0x508] sm:$0xff] }
 0x178   : > { %947 = vmatmul.mubr.f32.gmra.mrb[62].mxu1 %v486_v37 }
 0x179   : > { %1311 = vmatmul.mubr.f32.gmra.mrb[12].mxu0 %v340_v10  ;;  %v473_v10 = vld [vmem:[%s2925_s8 + $0x568] sm:$0xff] }
 0x17a   : > { %1316 = vmatprep.mubr.f32.mxu0 %v347_v13  ;;  %v478_v13 = vld [vmem:[%s2925_s8 + $0x590] sm:$0xff] }
 0x17d   : > { %1317 = vmatmul.mubr.f32.gmra.mrb[14].mxu0 %v346_v17  ;;  %v490_v17 = vld [vmem:[%s2925_s8 + $0x5f0] sm:$0xff] }
 0x17e   : > { %1322 = vmatprep.mubr.f32.mxu0 %v353_v20 }
 0x181   : > { %1323 = vmatmul.mubr.f32.gmra.mrb[16].mxu0 %v352_v24 }
 0x182   : > { %1328 = vmatprep.mubr.f32.mxu0 %v359_v27 }
 0x185   : > { %1329 = vmatmul.mubr.f32.gmra.mrb[18].mxu0 %v358_v31 }
 0x186   : > { %1334 = vmatprep.mubr.f32.mxu0 %v365_v34 }
 0x189   : > { %1335 = vmatmul.mubr.f32.gmra.mrb[20].mxu0 %v364_v38 }
 0x18a   : > { %1340 = vmatprep.mubr.f32.mxu0 %v371_v40 }
 0x18d   : > { %1341 = vmatmul.mubr.f32.gmra.mrb[22].mxu0 %v370_v41 }
 0x18e   : > { %1346 = vmatprep.mubr.f32.mxu0 %v377_v42 }
 0x191   : > { %1347 = vmatmul.mubr.f32.gmra.mrb[24].mxu0 %v376_v43 }
 0x192   : > { %1352 = vmatprep.mubr.f32.mxu0 %v383_v44 }
 0x195   : > { %1353 = vmatmul.mubr.f32.gmra.mrb[26].mxu0 %v382_v46 }
 0x196   : > { %1358 = vmatprep.mubr.f32.mxu0 %v389_v45 }
 0x199   : > { %1359 = vmatmul.mubr.f32.gmra.mrb[28].mxu0 %v388_v47 }
 0x19a   : > { %1364 = vmatprep.mubr.f32.mxu0 %v395_v48 }
 0x19d   : > { %1365 = vmatmul.mubr.f32.gmra.mrb[30].mxu0 %v394_v49 }
 0x19e   : > { %1370 = vmatprep.mubr.f32.mxu0 %v401_v50 }
 0x1a1   : > { %1371 = vmatmul.mubr.f32.gmra.mrb[32].mxu0 %v400_v51 }
 0x1a2   : > { %1376 = vmatprep.mubr.f32.mxu0 %v407_v52  ;;  %v686_v52 = vlaneseq }
 0x1a5   : > { %1377 = vmatmul.mubr.f32.gmra.mrb[34].mxu0 %v406_v53 }
 0x1a6   : > { %1382 = vmatprep.mubr.f32.mxu0 %v413_v54 }
 0x1a9   : > { %1383 = vmatmul.mubr.f32.gmra.mrb[36].mxu0 %v412_v55  ;;  %v687_v55 = vshrl.u32 %v686_v52, 7 }
 0x1aa   : > { %1388 = vmatprep.mubr.f32.mxu0 %v419_v56 }
 0x1ad   : > { %1389 = vmatmul.mubr.f32.gmra.mrb[38].mxu0 %v418_v57 }
 0x1ae   : > { %1394 = vmatprep.mubr.f32.mxu0 %v425_v58  ;;  %v688_v58 = vsub.s32 0, %v687_v55 }
 0x1b1   : > { %1395 = vmatmul.mubr.f32.gmra.mrb[40].mxu0 %v424_v59  ;;  %v684_v59 = vld [vmem:[#allocation7] sm:$0x3] }
 0x1b2   : > { %1400 = vmatprep.mubr.f32.mxu0 %v431_v60  ;;  %v692_v60 = vsub.s32 1, %v687_v55 }
 0x1b5   : > { %1401 = vmatmul.mubr.f32.gmra.mrb[42].mxu0 %v430_v61 }
 0x1b6   : > { %1406 = vmatprep.mubr.f32.mxu0 %v437_v62 }
 0x1b9   : > { %1407 = vmatmul.mubr.f32.gmra.mrb[44].mxu0 %v436_v63  ;;  %v3217_v63 = vrot.slane %v684_v59, %v688_v58 }
 0x1ba   : > { %1412 = vmatprep.mubr.f32.mxu0 %v443_v0  ;;  %v3219_v0 = vrot.slane %v684_v59, %v692_v60 }
 0x1bd   : > { %1413 = vmatmul.mubr.f32.gmra.mrb[46].mxu0 %v442_v1 }
 0x1be   : > { %1418 = vmatprep.mubr.f32.mxu0 %v449_v2 }
 0x1c1   : > { %1419 = vmatmul.mubr.f32.gmra.mrb[48].mxu0 %v448_v3 }
 0x1c2   : > { %1424 = vmatprep.mubr.f32.mxu0 %v455_v4 }
 0x1c5   : > { %1425 = vmatmul.mubr.f32.gmra.mrb[50].mxu0 %v454_v5 }
 0x1c6   : > { %1430 = vmatprep.mubr.f32.mxu0 %v461_v6 }
 0x1c9   : > { %1431 = vmatmul.mubr.f32.gmra.mrb[52].mxu0 %v460_v7 }
 0x1ca   : > { %1436 = vmatprep.mubr.f32.mxu0 %v467_v8 }
 0x1cd   : > { %1437 = vmatmul.mubr.f32.gmra.mrb[54].mxu0 %v466_v9 }
 0x1ce   : > { %1442 = vmatprep.mubr.f32.mxu0 %v473_v10 }
 0x1cf   : > { %v762_v18 = vpop.f32.mrb[0].mxu1 }
 0x1d0   : > { %v764_v19 = vpop.f32.mrb[1].mxu1  ;;  %v763_v3 = vadd.f32 %v762_v18, %v3217_v63 }
 0x1d1   : > { %1443 = vmatmul.mubr.f32.gmra.mrb[56].mxu0 %v472_v11  ;;  %v765_v4 = vadd.f32 %v764_v19, %v3219_v0 }
 0x1d2   : > { %1448 = vmatprep.mubr.f32.mxu0 %v479_v12 }
 0x1d3   : > { %v768_v20 = vpop.f32.mrb[2].mxu1 }
 0x1d4   : > { %v770_v21 = vpop.f32.mrb[3].mxu1  ;;  %v769_v10 = vadd.f32 %v768_v20, %v3217_v63 }
 0x1d5   : > { %1449 = vmatmul.mubr.f32.gmra.mrb[58].mxu0 %v478_v13  ;;  %v771_v12 = vadd.f32 %v770_v21, %v3219_v0 }
 0x1d6   : > { %1454 = vmatprep.mubr.f32.mxu0 %v485_v14 }
 0x1d7   : > { %v774_v22 = vpop.f32.mrb[4].mxu1 }
 0x1d8   : > { %v3147_v23 = vpop.f32.mrb[5].mxu1  ;;  %v775_v18 = vadd.f32 %v774_v22, %v3217_v63 }
 0x1d9   : > { %1455 = vmatmul.mubr.f32.gmra.mrb[60].mxu0 %v484_v15  ;;  %v777_v52 = vadd.f32 %v3147_v23, %v3219_v0 }
 0x1da   : > { %1460 = vmatprep.mubr.f32.mxu0 %v491_v16 }
 0x1db   : > { %v3149_v24 = vpop.f32.mrb[6].mxu1 }
 0x1dc   : > { %v3151_v25 = vpop.f32.mrb[7].mxu1  ;;  %v781_v60 = vadd.f32 %v3149_v24, %v3217_v63 }
 0x1dd   : > { %1461 = vmatmul.mubr.f32.gmra.mrb[62].mxu0 %v490_v17  ;;  %v783_v22 = vadd.f32 %v3151_v25, %v3219_v0 }
 0x1df   : > { %v3153_v26 = vpop.f32.mrb[8].mxu1 }
 0x1e0   : > { %v3155_v27 = vpop.f32.mrb[9].mxu1 }
 0x1e1   : > { %v789_v24 = vadd.f32 %v3155_v27, %v3219_v0 }
 0x1e3   : > { %v3157_v28 = vpop.f32.mrb[10].mxu1 }
 0x1e4   : > { %v3159_v29 = vpop.f32.mrb[11].mxu1 }
 0x1e7   : > { %v3161_v30 = vpop.f32.mrb[12].mxu1 }
 0x1e8   : > { %v3163_v31 = vpop.f32.mrb[13].mxu1 }
 0x1eb   : > { %v3165_v32 = vpop.f32.mrb[14].mxu1 }
 0x1ec   : > { %v3167_v33 = vpop.f32.mrb[15].mxu1 }
 0x1ef   : > { %v3169_v34 = vpop.f32.mrb[16].mxu1 }
 0x1f0   : > { %v3171_v35 = vpop.f32.mrb[17].mxu1 }
 0x1f3   : > { %v3173_v36 = vpop.f32.mrb[18].mxu1 }
 0x1f4   : > { %v3175_v37 = vpop.f32.mrb[19].mxu1 }
 0x1f7   : > { %v3177_v38 = vpop.f32.mrb[20].mxu1 }
 0x1f8   : > { %v3179_v39 = vpop.f32.mrb[21].mxu1 }
 0x1fb   : > { %v3181_v40 = vpop.f32.mrb[22].mxu1 }
 0x1fc   : > { %v3183_v41 = vpop.f32.mrb[23].mxu1 }
 0x1ff   : > { %v3185_v42 = vpop.f32.mrb[24].mxu1 }
 0x200   : > { %v3187_v43 = vpop.f32.mrb[25].mxu1 }
 0x203   : > { %v3189_v44 = vpop.f32.mrb[26].mxu1 }
 0x204   : > { %v3191_v46 = vpop.f32.mrb[27].mxu1 }
 0x207   : > { %v3193_v45 = vpop.f32.mrb[28].mxu1 }
 0x208   : > { %v3195_v47 = vpop.f32.mrb[29].mxu1 }
 0x20b   : > { %v3197_v48 = vpop.f32.mrb[30].mxu1 }
 0x20c   : > { %v3199_v49 = vpop.f32.mrb[31].mxu1 }
 0x20f   : > { %v3201_v50 = vpop.f32.mrb[32].mxu1 }
 0x210   : > { %v3203_v51 = vpop.f32.mrb[33].mxu1 }
 0x213   : > { %v3205_v53 = vpop.f32.mrb[34].mxu1 }
 0x214   : > { %v3207_v54 = vpop.f32.mrb[35].mxu1 }
 0x217   : > { %v3209_v56 = vpop.f32.mrb[36].mxu1 }
 0x218   : > { %v3211_v57 = vpop.f32.mrb[37].mxu1 }
 0x21b   : > { %v3213_v61 = vpop.f32.mrb[38].mxu1 }
 0x21c   : > { %v3215_v62 = vpop.f32.mrb[39].mxu1 }
 0x21f   : > { %v3221_v1 = vpop.f32.mrb[40].mxu1 }
 0x220   : > { %v3223_v2 = vpop.f32.mrb[41].mxu1 }
 0x223   : > { %v3227_v5 = vpop.f32.mrb[42].mxu1 }
 0x224   : > { %v3229_v7 = vpop.f32.mrb[43].mxu1 }
 0x227   : > { %v3233_v13 = vpop.f32.mrb[44].mxu1 }
 0x228   : > { %v3235_v15 = vpop.f32.mrb[45].mxu1 }
 0x22b   : > { %v3240_v55 = vpop.f32.mrb[46].mxu1 }
 0x22c   : > { %v3242_v21 = vpop.f32.mrb[47].mxu1 }
 0x234   : > { %v1276_v6 = vpop.f32.mrb[0].mxu0 }
 0x235   : > { %v2152_v8 = vadd.f32 %v1276_v6, %v763_v3  ;;  %v1278_v9 = vpop.f32.mrb[1].mxu0 }
 0x236   : > { %v2154_v11 = vadd.f32 %v1278_v9, %v765_v4  ;;  %v3248_v4 = vpop.f32.mrb[48].mxu1 }
 0x237   : > { %v3250_v23 = vpop.f32.mrb[49].mxu1 }
 0x238   : > { %v1282_v14 = vpop.f32.mrb[2].mxu0  ;;  %1570 = vmatprep.mubr.f32.mxu1 %v2154_v11 }
 0x239   : > { %v2156_v16 = vadd.f32 %v1282_v14, %v769_v10  ;;  %v1284_v17 = vpop.f32.mrb[3].mxu0  ;;  %1571 = vmatmul.mubr.f32.vlgmr.msra.gmra.mrb[64].mxu1 %v2152_v8  ;;  %v787_v10 = vadd.f32 %v3153_v26, %v3217_v63  ;;  %v795_v26 = vadd.f32 %v3159_v29, %v3219_v0 }
 0x23a   : > { %v2158_v19 = vadd.f32 %v1284_v17, %v771_v12  ;;  %v3256_v12 = vpop.f32.mrb[50].mxu1 }
 0x23b   : > { %v3258_v25 = vpop.f32.mrb[51].mxu1 }
 0x23c   : > { %v1288_v20 = vpop.f32.mrb[4].mxu0  ;;  %1575 = vmatprep.mubr.f32.mxu1 %v2158_v19 }
 0x23d   : > { %v2160_v58 = vadd.f32 %v1288_v20, %v775_v18  ;;  %v1290_v59 = vpop.f32.mrb[5].mxu0  ;;  %1576 = vmatmul.mubr.f32.gmra.mrb[66].mxu1 %v2156_v16  ;;  %v793_v18 = vadd.f32 %v3157_v28, %v3217_v63  ;;  %v801_v28 = vadd.f32 %v3163_v31, %v3219_v0 }
 0x23e   : > { %v2162_v3 = vadd.f32 %v1290_v59, %v777_v52  ;;  %v3264_v52 = vpop.f32.mrb[52].mxu1 }
 0x23f   : > { %v3266_v27 = vpop.f32.mrb[53].mxu1 }
 0x240   : > { %v1294_v6 = vpop.f32.mrb[6].mxu0  ;;  %1580 = vmatprep.mubr.f32.mxu1 %v2162_v3 }
 0x241   : > { %v2164_v8 = vadd.f32 %v1294_v6, %v781_v60  ;;  %v1296_v9 = vpop.f32.mrb[7].mxu0  ;;  %1581 = vmatmul.mubr.f32.gmra.mrb[68].mxu1 %v2160_v58  ;;  %v799_v60 = vadd.f32 %v3161_v30, %v3217_v63  ;;  %v807_v30 = vadd.f32 %v3167_v33, %v3219_v0 }
 0x242   : > { %v2166_v11 = vadd.f32 %v1296_v9, %v783_v22  ;;  %v3272_v22 = vpop.f32.mrb[54].mxu1 }
 0x243   : > { %v3274_v29 = vpop.f32.mrb[55].mxu1 }
 0x244   : > { %v1300_v14 = vpop.f32.mrb[8].mxu0  ;;  %1585 = vmatprep.mubr.f32.mxu1 %v2166_v11 }
 0x245   : > { %v2168_v16 = vadd.f32 %v1300_v14, %v787_v10  ;;  %v1302_v17 = vpop.f32.mrb[9].mxu0  ;;  %1586 = vmatmul.mubr.f32.gmra.mrb[70].mxu1 %v2164_v8  ;;  %v805_v10 = vadd.f32 %v3165_v32, %v3217_v63  ;;  %v813_v32 = vadd.f32 %v3171_v35, %v3219_v0 }
 0x246   : > { %v2170_v19 = vadd.f32 %v1302_v17, %v789_v24  ;;  %v3280_v24 = vpop.f32.mrb[56].mxu1 }
 0x247   : > { %v3282_v31 = vpop.f32.mrb[57].mxu1 }
 0x248   : > { %v1306_v20 = vpop.f32.mrb[10].mxu0  ;;  %1590 = vmatprep.mubr.f32.mxu1 %v2170_v19 }
 0x249   : > { %v2172_v58 = vadd.f32 %v1306_v20, %v793_v18  ;;  %v1308_v59 = vpop.f32.mrb[11].mxu0  ;;  %1591 = vmatmul.mubr.f32.gmra.mrb[72].mxu1 %v2168_v16  ;;  %v811_v18 = vadd.f32 %v3169_v34, %v3217_v63  ;;  %v819_v34 = vadd.f32 %v3175_v37, %v3219_v0 }
 0x24a   : > { %v2174_v3 = vadd.f32 %v1308_v59, %v795_v26  ;;  %v3288_v26 = vpop.f32.mrb[58].mxu1 }
 0x24b   : > { %v3290_v33 = vpop.f32.mrb[59].mxu1 }
 0x24c   : > { %v1312_v6 = vpop.f32.mrb[12].mxu0  ;;  %1595 = vmatprep.mubr.f32.mxu1 %v2174_v3 }
 0x24d   : > { %v2176_v8 = vadd.f32 %v1312_v6, %v799_v60  ;;  %v1314_v9 = vpop.f32.mrb[13].mxu0  ;;  %1596 = vmatmul.mubr.f32.gmra.mrb[74].mxu1 %v2172_v58  ;;  %v817_v60 = vadd.f32 %v3173_v36, %v3217_v63  ;;  %v825_v36 = vadd.f32 %v3179_v39, %v3219_v0 }
 0x24e   : > { %v2178_v11 = vadd.f32 %v1314_v9, %v801_v28  ;;  %v3296_v28 = vpop.f32.mrb[60].mxu1 }
 0x24f   : > { %v3298_v35 = vpop.f32.mrb[61].mxu1 }
 0x250   : > { %v1318_v14 = vpop.f32.mrb[14].mxu0  ;;  %1600 = vmatprep.mubr.f32.mxu1 %v2178_v11 }
 0x251   : > { %v2180_v16 = vadd.f32 %v1318_v14, %v805_v10  ;;  %v1320_v17 = vpop.f32.mrb[15].mxu0  ;;  %1601 = vmatmul.mubr.f32.gmra.mrb[76].mxu1 %v2176_v8  ;;  %v823_v10 = vadd.f32 %v3177_v38, %v3217_v63  ;;  %v831_v38 = vadd.f32 %v3183_v41, %v3219_v0  ;;  %v841_v41 = vadd.f32 %v3189_v44, %v3217_v63 }
 0x252   : > { %v2182_v19 = vadd.f32 %v1320_v17, %v807_v30  ;;  %v3304_v30 = vpop.f32.mrb[62].mxu1 }
 0x253   : > { %v3306_v37 = vpop.f32.mrb[63].mxu1 }
 0x254   : > { %v1324_v20 = vpop.f32.mrb[16].mxu0  ;;  %1605 = vmatprep.mubr.f32.mxu1 %v2182_v19 }
 0x255   : > { %v2184_v58 = vadd.f32 %v1324_v20, %v811_v18  ;;  %v1326_v59 = vpop.f32.mrb[17].mxu0  ;;  %1606 = vmatmul.mubr.f32.gmra.mrb[78].mxu1 %v2180_v16  ;;  %v829_v18 = vadd.f32 %v3181_v40, %v3217_v63 }
 0x256   : > { %v2186_v3 = vadd.f32 %v1326_v59, %v813_v32 }
 0x258   : > { %v1330_v6 = vpop.f32.mrb[18].mxu0  ;;  %1610 = vmatprep.mubr.f32.mxu1 %v2186_v3 }
 0x259   : > { %v2188_v8 = vadd.f32 %v1330_v6, %v817_v60  ;;  %v1332_v9 = vpop.f32.mrb[19].mxu0  ;;  %1611 = vmatmul.mubr.f32.gmra.mrb[80].mxu1 %v2184_v58  ;;  %v835_v58 = vadd.f32 %v3185_v42, %v3217_v63  ;;  %v837_v60 = vadd.f32 %v3187_v43, %v3219_v0  ;;  %v847_v43 = vadd.f32 %v3193_v45, %v3217_v63 }
 0x25a   : > { %v2190_v11 = vadd.f32 %v1332_v9, %v819_v34 }
 0x25c   : > { %v1336_v14 = vpop.f32.mrb[20].mxu0  ;;  %1615 = vmatprep.mubr.f32.mxu1 %v2190_v11 }
 0x25d   : > { %v2192_v16 = vadd.f32 %v1336_v14, %v823_v10  ;;  %v1338_v17 = vpop.f32.mrb[21].mxu0  ;;  %1616 = vmatmul.mubr.f32.gmra.mrb[82].mxu1 %v2188_v8  ;;  %v843_v8 = vadd.f32 %v3191_v46, %v3219_v0  ;;  %v853_v46 = vadd.f32 %v3197_v48, %v3217_v63 }
 0x25e   : > { %v2194_v19 = vadd.f32 %v1338_v17, %v825_v36  ;;  %v849_v36 = vadd.f32 %v3195_v47, %v3219_v0  ;;  %v859_v47 = vadd.f32 %v3201_v50, %v3217_v63 }
 0x260   : > { %v1342_v32 = vpop.f32.mrb[22].mxu0  ;;  %1620 = vmatprep.mubr.f32.mxu1 %v2194_v19 }
 0x261   : > { %v2196_v20 = vadd.f32 %v1342_v32, %v829_v18  ;;  %v1344_v39 = vpop.f32.mrb[23].mxu0  ;;  %1621 = vmatmul.mubr.f32.gmra.mrb[84].mxu1 %v2192_v16  ;;  %v855_v18 = vadd.f32 %v3199_v49, %v3219_v0  ;;  %v865_v49 = vadd.f32 %v3205_v53, %v3217_v63 }
 0x262   : > { %v2198_v59 = vadd.f32 %v1344_v39, %v831_v38 }
 0x264   : > { %v1348_v3 = vpop.f32.mrb[24].mxu0  ;;  %1625 = vmatprep.mubr.f32.mxu1 %v2198_v59 }
 0x265   : > { %v2200_v34 = vadd.f32 %v1348_v3, %v835_v58  ;;  %v1350_v40 = vpop.f32.mrb[25].mxu0  ;;  %1626 = vmatmul.mubr.f32.gmra.mrb[86].mxu1 %v2196_v20  ;;  %v861_v20 = vadd.f32 %v3203_v51, %v3219_v0  ;;  %v871_v51 = vadd.f32 %v3209_v56, %v3217_v63 }
 0x266   : > { %v2202_v6 = vadd.f32 %v1350_v40, %v837_v60  ;;  %v867_v60 = vadd.f32 %v3207_v54, %v3219_v0  ;;  %v877_v54 = vadd.f32 %v3213_v61, %v3217_v63 }
 0x268   : > { %v1354_v9 = vpop.f32.mrb[26].mxu0  ;;  %1630 = vmatprep.mubr.f32.mxu1 %v2202_v6 }
 0x269   : > { %v2204_v10 = vadd.f32 %v1354_v9, %v841_v41  ;;  %v1356_v42 = vpop.f32.mrb[27].mxu0  ;;  %1631 = vmatmul.mubr.f32.gmra.mrb[88].mxu1 %v2200_v34  ;;  %v873_v41 = vadd.f32 %v3211_v57, %v3219_v0  ;;  %v883_v57 = vadd.f32 %v3221_v1, %v3217_v63 }
 0x26a   : > { %v2206_v11 = vadd.f32 %v1356_v42, %v843_v8 }
 0x26c   : > { %v1360_v14 = vpop.f32.mrb[28].mxu0  ;;  %1635 = vmatprep.mubr.f32.mxu1 %v2206_v11 }
 0x26d   : > { %v2208_v16 = vadd.f32 %v1360_v14, %v847_v43  ;;  %v1362_v44 = vpop.f32.mrb[29].mxu0  ;;  %1636 = vmatmul.mubr.f32.gmra.mrb[90].mxu1 %v2204_v10  ;;  %v879_v10 = vadd.f32 %v3215_v62, %v3219_v0  ;;  %v889_v62 = vadd.f32 %v3227_v5, %v3217_v63 }
 0x26e   : > { %v2210_v17 = vadd.f32 %v1362_v44, %v849_v36  ;;  %v885_v36 = vadd.f32 %v3223_v2, %v3219_v0  ;;  %v895_v2 = vadd.f32 %v3233_v13, %v3217_v63 }
 0x270   : > { %v1366_v19 = vpop.f32.mrb[30].mxu0  ;;  %1640 = vmatprep.mubr.f32.mxu1 %v2210_v17 }
 0x271   : > { %v2212_v38 = vadd.f32 %v1366_v19, %v853_v46  ;;  %v1368_v45 = vpop.f32.mrb[31].mxu0  ;;  %1641 = vmatmul.mubr.f32.gmra.mrb[92].mxu1 %v2208_v16  ;;  %v891_v46 = vadd.f32 %v3229_v7, %v3219_v0  ;;  %v901_v7 = vadd.f32 %v3240_v55, %v3217_v63 }
 0x272   : > { %v2214_v32 = vadd.f32 %v1368_v45, %v855_v18 }
 0x274   : > { %v1372_v39 = vpop.f32.mrb[32].mxu0  ;;  %1645 = vmatprep.mubr.f32.mxu1 %v2214_v32 }
 0x275   : > { %v2216_v58 = vadd.f32 %v1372_v39, %v859_v47  ;;  %v1374_v48 = vpop.f32.mrb[33].mxu0  ;;  %1646 = vmatmul.mubr.f32.gmra.mrb[94].mxu1 %v2212_v38  ;;  %v897_v38 = vadd.f32 %v3235_v15, %v3219_v0  ;;  %v907_v15 = vadd.f32 %v3248_v4, %v3217_v63 }
 0x276   : > { %v2218_v59 = vadd.f32 %v1374_v48, %v861_v20  ;;  %v903_v20 = vadd.f32 %v3242_v21, %v3219_v0  ;;  %v913_v21 = vadd.f32 %v3256_v12, %v3217_v63 }
 0x278   : > { %v1378_v3 = vpop.f32.mrb[34].mxu0  ;;  %1650 = vmatprep.mubr.f32.mxu1 %v2218_v59 }
 0x279   : > { %v2220_v34 = vadd.f32 %v1378_v3, %v865_v49  ;;  %v1380_v50 = vpop.f32.mrb[35].mxu0  ;;  %1651 = vmatmul.mubr.f32.gmra.mrb[96].mxu1 %v2216_v58  ;;  %v909_v49 = vadd.f32 %v3250_v23, %v3219_v0  ;;  %v919_v23 = vadd.f32 %v3264_v52, %v3217_v63 }
 0x27a   : > { %v2222_v40 = vadd.f32 %v1380_v50, %v867_v60 }
 0x27c   : > { %v1384_v6 = vpop.f32.mrb[36].mxu0  ;;  %1655 = vmatprep.mubr.f32.mxu1 %v2222_v40 }
 0x27d   : > { %v2224_v8 = vadd.f32 %v1384_v6, %v871_v51  ;;  %v1386_v53 = vpop.f32.mrb[37].mxu0  ;;  %1656 = vmatmul.mubr.f32.gmra.mrb[98].mxu1 %v2220_v34  ;;  %v915_v34 = vadd.f32 %v3258_v25, %v3219_v0  ;;  %v925_v25 = vadd.f32 %v3272_v22, %v3217_v63 }
 0x27e   : > { %v2226_v9 = vadd.f32 %v1386_v53, %v873_v41  ;;  %v921_v41 = vadd.f32 %v3266_v27, %v3219_v0  ;;  %v931_v27 = vadd.f32 %v3280_v24, %v3217_v63 }
 0x280   : > { %v1390_v42 = vpop.f32.mrb[38].mxu0  ;;  %1660 = vmatprep.mubr.f32.mxu1 %v2226_v9 }
 0x281   : > { %v2228_v43 = vadd.f32 %v1390_v42, %v877_v54  ;;  %v1392_v56 = vpop.f32.mrb[39].mxu0  ;;  %1661 = vmatmul.mubr.f32.gmra.mrb[100].mxu1 %v2224_v8  ;;  %v927_v54 = vadd.f32 %v3274_v29, %v3219_v0  ;;  %v937_v29 = vadd.f32 %v3288_v26, %v3217_v63 }
 0x282   : > { %v2230_v11 = vadd.f32 %v1392_v56, %v879_v10 }
 0x284   : > { %v1396_v14 = vpop.f32.mrb[40].mxu0  ;;  %1665 = vmatprep.mubr.f32.mxu1 %v2230_v11 }
 0x285   : > { %v2232_v16 = vadd.f32 %v1396_v14, %v883_v57  ;;  %v1398_v61 = vpop.f32.mrb[41].mxu0  ;;  %1666 = vmatmul.mubr.f32.gmra.mrb[102].mxu1 %v2228_v43  ;;  %v933_v43 = vadd.f32 %v3282_v31, %v3219_v0  ;;  %v943_v31 = vadd.f32 %v3296_v28, %v3217_v63 }
 0x286   : > { %v2234_v44 = vadd.f32 %v1398_v61, %v885_v36  ;;  %v939_v36 = vadd.f32 %v3290_v33, %v3219_v0  ;;  %v949_v33 = vadd.f32 %v3304_v30, %v3217_v63 }
 0x288   : > { %v1402_v17 = vpop.f32.mrb[42].mxu0  ;;  %1670 = vmatprep.mubr.f32.mxu1 %v2234_v44 }
 0x289   : > { %v2236_v18 = vadd.f32 %v1402_v17, %v889_v62  ;;  %v1404_v1 = vpop.f32.mrb[43].mxu0  ;;  %1671 = vmatmul.mubr.f32.gmra.mrb[104].mxu1 %v2232_v16  ;;  %v945_v62 = vadd.f32 %v3298_v35, %v3219_v0  ;;  %v3393_v35 = vld [vmem:[#allocation10] ss:$0 sm:$0xff] }
 0x28a   : > { %v2238_v19 = vadd.f32 %v1404_v1, %v891_v46 }
 0x28c   : > { %v1408_v45 = vpop.f32.mrb[44].mxu0  ;;  %1675 = vmatprep.mubr.f32.mxu1 %v2238_v19 }
 0x28d   : > { %v2240_v47 = vadd.f32 %v1408_v45, %v895_v2  ;;  %v1410_v5 = vpop.f32.mrb[45].mxu0  ;;  %1676 = vmatmul.mubr.f32.gmra.mrb[106].mxu1 %v2236_v18  ;;  %v951_v18 = vadd.f32 %v3306_v37, %v3219_v0 }
 0x28e   : > { %v2242_v32 = vadd.f32 %v1410_v5, %v897_v38 }
 0x290   : > { %v1414_v39 = vpop.f32.mrb[46].mxu0  ;;  %1680 = vmatprep.mubr.f32.mxu1 %v2242_v32 }
 0x291   : > { %v2244_v58 = vadd.f32 %v1414_v39, %v901_v7  ;;  %v1416_v13 = vpop.f32.mrb[47].mxu0  ;;  %1681 = vmatmul.mubr.f32.gmra.mrb[108].mxu1 %v2240_v47 }
 0x292   : > { %v2246_v48 = vadd.f32 %v1416_v13, %v903_v20 }
 0x294   : > { %v1420_v59 = vpop.f32.mrb[48].mxu0  ;;  %1685 = vmatprep.mubr.f32.mxu1 %v2246_v48 }
 0x295   : > { %v2248_v60 = vadd.f32 %v1420_v59, %v907_v15  ;;  %v1422_v55 = vpop.f32.mrb[49].mxu0  ;;  %1686 = vmatmul.mubr.f32.gmra.mrb[110].mxu1 %v2244_v58 }
 0x296   : > { %v2250_v3 = vadd.f32 %v1422_v55, %v909_v49 }
 0x298   : > { %v1426_v50 = vpop.f32.mrb[50].mxu0  ;;  %1690 = vmatprep.mubr.f32.mxu1 %v2250_v3 }
 0x299   : > { %v2252_v51 = vadd.f32 %v1426_v50, %v913_v21  ;;  %v1428_v4 = vpop.f32.mrb[51].mxu0  ;;  %1691 = vmatmul.mubr.f32.gmra.mrb[112].mxu1 %v2248_v60 }
 0x29a   : > { %v2254_v40 = vadd.f32 %v1428_v4, %v915_v34 }
 0x29c   : > { %v1432_v6 = vpop.f32.mrb[52].mxu0  ;;  %1695 = vmatprep.mubr.f32.mxu1 %v2254_v40 }
 0x29d   : > { %v2256_v8 = vadd.f32 %v1432_v6, %v919_v23  ;;  %v1434_v12 = vpop.f32.mrb[53].mxu0  ;;  %1696 = vmatmul.mubr.f32.gmra.mrb[114].mxu1 %v2252_v51 }
 0x29e   : > { %v2258_v53 = vadd.f32 %v1434_v12, %v921_v41 }
 0x2a0   : > { %v1438_v9 = vpop.f32.mrb[54].mxu0  ;;  %1700 = vmatprep.mubr.f32.mxu1 %v2258_v53 }
 0x2a1   : > { %v2260_v10 = vadd.f32 %v1438_v9, %v925_v25  ;;  %v1440_v52 = vpop.f32.mrb[55].mxu0  ;;  %1701 = vmatmul.mubr.f32.gmra.mrb[116].mxu1 %v2256_v8 }
 0x2a2   : > { %v2262_v42 = vadd.f32 %v1440_v52, %v927_v54 }
 0x2a4   : > { %v1444_v56 = vpop.f32.mrb[56].mxu0  ;;  %1705 = vmatprep.mubr.f32.mxu1 %v2262_v42 }
 0x2a5   : > { %v2264_v57 = vadd.f32 %v1444_v56, %v931_v27  ;;  %v1446_v22 = vpop.f32.mrb[57].mxu0  ;;  %1706 = vmatmul.mubr.f32.gmra.mrb[118].mxu1 %v2260_v10 }
 0x2a6   : > { %v2266_v11 = vadd.f32 %v1446_v22, %v933_v43 }
 0x2a8   : > { %v1450_v14 = vpop.f32.mrb[58].mxu0  ;;  %1710 = vmatprep.mubr.f32.mxu1 %v2266_v11 }
 0x2a9   : > { %v2268_v16 = vadd.f32 %v1450_v14, %v937_v29  ;;  %v1452_v24 = vpop.f32.mrb[59].mxu0  ;;  %1711 = vmatmul.mubr.f32.gmra.mrb[120].mxu1 %v2264_v57 }
 0x2aa   : > { %v2270_v61 = vadd.f32 %v1452_v24, %v939_v36 }
 0x2ac   : > { %v1456_v44 = vpop.f32.mrb[60].mxu0  ;;  %1715 = vmatprep.mubr.f32.mxu1 %v2270_v61 }
 0x2ad   : > { %v2272_v26 = vadd.f32 %v1456_v44, %v943_v31  ;;  %v1458_v46 = vpop.f32.mrb[61].mxu0  ;;  %1716 = vmatmul.mubr.f32.gmra.mrb[122].mxu1 %v2268_v16 }
 0x2ae   : > { %v2274_v17 = vadd.f32 %v1458_v46, %v945_v62 }
 0x2b0   : > { %v1462_v1 = vpop.f32.mrb[62].mxu0  ;;  %1720 = vmatprep.mubr.f32.mxu1 %v2274_v17 }
 0x2b1   : > { %v2276_v28 = vadd.f32 %v1462_v1, %v949_v33  ;;  %v1464_v2 = vpop.f32.mrb[63].mxu0  ;;  %1721 = vmatmul.mubr.f32.gmra.mrb[124].mxu1 %v2272_v26 }
 0x2b2   : > { %v2278_v19 = vadd.f32 %v1464_v2, %v951_v18 }
 0x2b4   : > { %1725 = vmatprep.mubr.f32.mxu1 %v2278_v19 }
 0x2b5   : > { %1726 = vmatmul.mubr.f32.gmra.mrb[126].mxu1 %v2276_v28 }
 0x30c   : > { %v1572_v38 = vpop.f32.mrb[64].mxu1 }
 0x30d   : > { %v1573_v45 = vadd.f32 %v3393_v35, %v1572_v38  ;;  %v1574_v47 = vpop.f32.mrb[65].mxu1 }
 0x30f   : > { %1731 = vst [vmem:[%s3396_s26] sm:$0xff] %v1573_v45 }
 0x310   : > { %v1577_v63 = vpop.f32.mrb[66].mxu1 }
 0x311   : > { %v1578_v0 = vadd.f32 %v3393_v35, %v1577_v63  ;;  %v1579_v30 = vpop.f32.mrb[67].mxu1 }
 0x313   : > { %1732 = vst [vmem:[%s3396_s26 + $0x8] sm:$0xff] %v1578_v0 }
 0x314   : > { %v1582_v37 = vpop.f32.mrb[68].mxu1 }
 0x315   : > { %v1583_v5 = vadd.f32 %v3393_v35, %v1582_v37  ;;  %v1584_v7 = vpop.f32.mrb[69].mxu1 }
 0x317   : > { %1733 = vst [vmem:[%s3396_s26 + $0x10] sm:$0xff] %v1583_v5 }
 0x318   : > { %v1587_v32 = vpop.f32.mrb[70].mxu1 }
 0x319   : > { %v1588_v20 = vadd.f32 %v3393_v35, %v1587_v32  ;;  %v1589_v39 = vpop.f32.mrb[71].mxu1 }
 0x31b   : > { %1734 = vst [vmem:[%s3396_s26 + $0x18] sm:$0xff] %v1588_v20 }
 0x31c   : > { %v1592_v58 = vpop.f32.mrb[72].mxu1 }
 0x31d   : > { %v1593_v13 = vadd.f32 %v3393_v35, %v1592_v58  ;;  %v1594_v15 = vpop.f32.mrb[73].mxu1 }
 0x31f   : > { %1735 = vst [vmem:[%s3396_s26 + $0x20] sm:$0xff] %v1593_v13 }
 0x320   : > { %v1597_v48 = vpop.f32.mrb[74].mxu1 }
 0x321   : > { %v1598_v49 = vadd.f32 %v3393_v35, %v1597_v48  ;;  %v1599_v59 = vpop.f32.mrb[75].mxu1 }
 0x323   : > { %1736 = vst [vmem:[%s3396_s26 + $0x28] sm:$0xff] %v1598_v49 }
 0x324   : > { %v1602_v60 = vpop.f32.mrb[76].mxu1 }
 0x325   : > { %v1603_v55 = vadd.f32 %v3393_v35, %v1602_v60  ;;  %v1604_v21 = vpop.f32.mrb[77].mxu1 }
 0x327   : > { %1737 = vst [vmem:[%s3396_s26 + $0x30] sm:$0xff] %v1603_v55 }
 0x328   : > { %v1607_v3 = vpop.f32.mrb[78].mxu1 }
 0x329   : > { %v1608_v34 = vadd.f32 %v3393_v35, %v1607_v3  ;;  %v1609_v50 = vpop.f32.mrb[79].mxu1 }
 0x32b   : > { %1738 = vst [vmem:[%s3396_s26 + $0x38] sm:$0xff] %v1608_v34 }
 0x32c   : > { %v1612_v51 = vpop.f32.mrb[80].mxu1 }
 0x32d   : > { %v1613_v4 = vadd.f32 %v3393_v35, %v1612_v51  ;;  %v1614_v23 = vpop.f32.mrb[81].mxu1 }
 0x32f   : > { %1739 = vst [vmem:[%s3396_s26 + $0x40] sm:$0xff] %v1613_v4 }
 0x330   : > { %v1617_v40 = vpop.f32.mrb[82].mxu1 }
 0x331   : > { %v1618_v41 = vadd.f32 %v3393_v35, %v1617_v40  ;;  %v1619_v6 = vpop.f32.mrb[83].mxu1 }
 0x333   : > { %1740 = vst [vmem:[%s3396_s26 + $0x48] sm:$0xff] %v1618_v41 }
 0x334   : > { %v1622_v8 = vpop.f32.mrb[84].mxu1 }
 0x335   : > { %v1623_v12 = vadd.f32 %v3393_v35, %v1622_v8  ;;  %v1624_v25 = vpop.f32.mrb[85].mxu1 }
 0x337   : > { %1741 = vst [vmem:[%s3396_s26 + $0x50] sm:$0xff] %v1623_v12 }
 0x338   : > { %v1627_v53 = vpop.f32.mrb[86].mxu1 }
 0x339   : > { %v1628_v54 = vadd.f32 %v3393_v35, %v1627_v53  ;;  %v1629_v9 = vpop.f32.mrb[87].mxu1 }
 0x33b   : > { %1742 = vst [vmem:[%s3396_s26 + $0x58] sm:$0xff] %v1628_v54 }
 0x33c   : > { %v1632_v10 = vpop.f32.mrb[88].mxu1 }
 0x33d   : > { %v1633_v52 = vadd.f32 %v3393_v35, %v1632_v10  ;;  %v1634_v27 = vpop.f32.mrb[89].mxu1 }
 0x33f   : > { %1743 = vst [vmem:[%s3396_s26 + $0x60] sm:$0xff] %v1633_v52 }
 0x340   : > { %v1637_v42 = vpop.f32.mrb[90].mxu1 }
 0x341   : > { %v1638_v43 = vadd.f32 %v3393_v35, %v1637_v42  ;;  %v1639_v56 = vpop.f32.mrb[91].mxu1 }
 0x343   : > { %1744 = vst [vmem:[%s3396_s26 + $0x68] sm:$0xff] %v1638_v43 }
 0x344   : > { %v1642_v57 = vpop.f32.mrb[92].mxu1 }
 0x345   : > { %v1643_v22 = vadd.f32 %v3393_v35, %v1642_v57  ;;  %v1644_v29 = vpop.f32.mrb[93].mxu1 }
 0x347   : > { %1745 = vst [vmem:[%s3396_s26 + $0x70] sm:$0xff] %v1643_v22 }
 0x348   : > { %v1647_v11 = vpop.f32.mrb[94].mxu1 }
 0x349   : > { %v1648_v36 = vadd.f32 %v3393_v35, %v1647_v11  ;;  %v1649_v14 = vpop.f32.mrb[95].mxu1 }
 0x34b   : > { %1746 = vst [vmem:[%s3396_s26 + $0x78] sm:$0xff] %v1648_v36 }
 0x34c   : > { %v1652_v16 = vpop.f32.mrb[96].mxu1 }
 0x34d   : > { %v1653_v24 = vadd.f32 %v3393_v35, %v1652_v16  ;;  %v1654_v31 = vpop.f32.mrb[97].mxu1 }
 0x34f   : > { %1747 = vst [vmem:[%s3396_s26 + $0x80] sm:$0xff] %v1653_v24 }
 0x350   : > { %v1657_v61 = vpop.f32.mrb[98].mxu1 }
 0x351   : > { %v1658_v62 = vadd.f32 %v3393_v35, %v1657_v61  ;;  %v1659_v44 = vpop.f32.mrb[99].mxu1 }
 0x353   : > { %1748 = vst [vmem:[%s3396_s26 + $0x88] sm:$0xff] %v1658_v62 }
 0x354   : > { %v1662_v26 = vpop.f32.mrb[100].mxu1 }
 0x355   : > { %v1663_v46 = vadd.f32 %v3393_v35, %v1662_v26  ;;  %v1664_v33 = vpop.f32.mrb[101].mxu1 }
 0x357   : > { %1749 = vst [vmem:[%s3396_s26 + $0x90] sm:$0xff] %v1663_v46 }
 0x358   : > { %v1667_v17 = vpop.f32.mrb[102].mxu1 }
 0x359   : > { %v1668_v18 = vadd.f32 %v3393_v35, %v1667_v17  ;;  %v1669_v1 = vpop.f32.mrb[103].mxu1 }
 0x35b   : > { %1750 = vst [vmem:[%s3396_s26 + $0x98] sm:$0xff] %v1668_v18 }
 0x35c   : > { %v1672_v28 = vpop.f32.mrb[104].mxu1 }
 0x35d   : > { %v1673_v2 = vadd.f32 %v3393_v35, %v1672_v28  ;;  %v1674_v19 = vpop.f32.mrb[105].mxu1 }
 0x35f   : > { %1751 = vst [vmem:[%s3396_s26 + $0xa0] sm:$0xff] %v1673_v2 }
 0x360   : > { %v1677_v38 = vpop.f32.mrb[106].mxu1 }
 0x361   : > { %v1678_v45 = vadd.f32 %v3393_v35, %v1677_v38  ;;  %v1679_v47 = vpop.f32.mrb[107].mxu1 }
 0x363   : > { %1752 = vst [vmem:[%s3396_s26 + $0xa8] sm:$0xff] %v1678_v45 }
 0x364   : > { %v1682_v63 = vpop.f32.mrb[108].mxu1 }
 0x365   : > { %v1683_v0 = vadd.f32 %v3393_v35, %v1682_v63  ;;  %v1684_v30 = vpop.f32.mrb[109].mxu1 }
 0x367   : > { %1753 = vst [vmem:[%s3396_s26 + $0xb0] sm:$0xff] %v1683_v0 }
 0x368   : > { %v1687_v37 = vpop.f32.mrb[110].mxu1 }
 0x369   : > { %v1688_v5 = vadd.f32 %v3393_v35, %v1687_v37  ;;  %v1689_v7 = vpop.f32.mrb[111].mxu1 }
 0x36b   : > { %1754 = vst [vmem:[%s3396_s26 + $0xb8] sm:$0xff] %v1688_v5 }
 0x36c   : > { %v1692_v32 = vpop.f32.mrb[112].mxu1 }
 0x36d   : > { %v1693_v20 = vadd.f32 %v3393_v35, %v1692_v32  ;;  %v1694_v39 = vpop.f32.mrb[113].mxu1 }
 0x36f   : > { %1755 = vst [vmem:[%s3396_s26 + $0xc0] sm:$0xff] %v1693_v20 }
 0x370   : > { %v1697_v58 = vpop.f32.mrb[114].mxu1 }
 0x371   : > { %v1698_v13 = vadd.f32 %v3393_v35, %v1697_v58  ;;  %v1699_v15 = vpop.f32.mrb[115].mxu1 }
 0x373   : > { %1756 = vst [vmem:[%s3396_s26 + $0xc8] sm:$0xff] %v1698_v13 }
 0x374   : > { %v1702_v48 = vpop.f32.mrb[116].mxu1 }
 0x375   : > { %v1703_v49 = vadd.f32 %v3393_v35, %v1702_v48  ;;  %v1704_v59 = vpop.f32.mrb[117].mxu1 }
 0x377   : > { %1757 = vst [vmem:[%s3396_s26 + $0xd0] sm:$0xff] %v1703_v49 }
 0x378   : > { %v1707_v60 = vpop.f32.mrb[118].mxu1 }
 0x379   : > { %v1708_v55 = vadd.f32 %v3393_v35, %v1707_v60  ;;  %v1709_v21 = vpop.f32.mrb[119].mxu1 }
 0x37b   : > { %1758 = vst [vmem:[%s3396_s26 + $0xd8] sm:$0xff] %v1708_v55 }
 0x37c   : > { %v1712_v3 = vpop.f32.mrb[120].mxu1 }
 0x37d   : > { %v1713_v34 = vadd.f32 %v3393_v35, %v1712_v3  ;;  %v1714_v50 = vpop.f32.mrb[121].mxu1 }
 0x37f   : > { %1759 = vst [vmem:[%s3396_s26 + $0xe0] sm:$0xff] %v1713_v34 }
 0x380   : > { %v1717_v51 = vpop.f32.mrb[122].mxu1 }
 0x381   : > { %v1718_v4 = vadd.f32 %v3393_v35, %v1717_v51  ;;  %v1719_v23 = vpop.f32.mrb[123].mxu1 }
 0x383   : > { %1760 = vst [vmem:[%s3396_s26 + $0xe8] sm:$0xff] %v1718_v4 }
 0x384   : > { %v1722_v40 = vpop.f32.mrb[124].mxu1 }
 0x385   : > { %v1723_v41 = vadd.f32 %v3393_v35, %v1722_v40  ;;  %v1724_v6 = vpop.f32.mrb[125].mxu1 }
 0x387   : > { %1761 = vst [vmem:[%s3396_s26 + $0xf0] sm:$0xff] %v1723_v41 }
 0x388   : > { %v1727_v8 = vpop.f32.mrb[126].mxu1 }
 0x389   : > { %v1728_v12 = vadd.f32 %v3393_v35, %v1727_v8  ;;  %v1729_v25 = vpop.f32.mrb[127].mxu1 }
 0x38b   : > { %1762 = vst [vmem:[%s3396_s26 + $0xf8] sm:$0xff] %v1728_v12 }
 0x38c   : > { %2597 = shalt.err (!%p2594_p13)
}
 0x38d   : > { %s2598_s6 = scalar_lea.hbm %s3464_s17, 4096  ;;  %s2602_s8 = scalar_lea.hbm %s3517_s5, 8192 }
 0x38e   : > { %p2599_p9 = scmp.ne.s32.totalorder %s3464_s17, %s2598_s6  ;;  %p2603_p6 = scmp.lt.u32.totalorder %s3464_s17, %s3517_s5 }
 0x38f   : > { %p2604_p10 = scmp.lt.u32.totalorder %s2602_s8, %s2598_s6  ;;  %p2606_p4 = scmp.lt.u32.totalorder %s2598_s6, %s3464_s17 }
 0x390   : > { %p2600_p0 = pnand %p2599_p9, %p2872_p8 }
 0x391   : > { %p2605_p3 = por %p2604_p10, %p2603_p6 }
 0x392   : > { %p2601_p11 = pneg %p2600_p0 }
 0x393   : > { %p2607_p5 = por %p2606_p4, %p2605_p3 }
 0x395   : > { %p2608_p7 = pnand %p2607_p5, %p2601_p11 }
 0x397   : > { %2611 = shalt.err (!%p2608_p7)
}
 0x398   : > { %s2673_s30 = smov 128   ;;  %s2674_s27 = smov 8  }
 0x399   : > { %2364 = dma.vmem_to_hbm [thread:$0]  (%p2872_p8), %s3466_s10, 4096, %s3464_s17, %s1764_s23, %s2673_s30, %s2673_s30, %s2674_s27  }
 0x39a PF: > { %s1792_s13 = sand.u32 1, %s2646_s18   ;;  %p3535_p12 = scmp.ne.s32.totalorder %s3522_s25, 0 }
 0x39b   : > { %p3536_p2 = scmp.ge.s32.totalorder %s2658_s21, 2  ;;  %s1793_s9 = scalar_lea.sflag [#allocation4], %s1792_s13 }
 0x39d   : > { %p2384_p1 = pnand %p3536_p2, %p3535_p12 }
 0x39f   : > { %2641 = dma.done.wait (!%p2384_p1), %s1793_s9, 4096  }
 0x3a0   : > { %2643 = vsyncadd (!%p2384_p1), %s1793_s9, 4294963200  ;;  %p20_p13 = scmp.ge.s32.totalorder %s2859_s12, 4   ;;  %s3537_s18 = smov %s2650_s19 }
 0x3a1   : > { %s3538_s19 = smov %s2654_s20  ;;  %s3539_s20 = smov %s2868_s15 }
 0x3a2   : > { %s3540_s21 = smov %s2859_s12  ;;  %22 = sbr.rel (!%p20_p13) target bundleno = 7 (0x7), region = 101 }
 0x3a9   :  { %1798 = vsyncpa [#allocation3], 1 }
 0x3aa   :  { %1800 = vsyncpa [#allocation3 + $0x1], 1 }
 0x3ab   :  { %1801 = vsyncpa [#allocation6], 1 }
 0x3ac   :  { %1802 = vsyncpa [#allocation9], 1 }
 0x3ad   :  { %1803 = vsyncpa [#allocation4], 1 }
 0x3ae   :  { %1805 = vsyncpa [#allocation4 + $0x1], 1 }

</bundles_post_ra>
